<compile_context>
chip_gen: v7x
topology: tpu7x:2x2x1
jax: 0.10.0
libtpu: 0.0.40
codegen_flags: <defaults>
</compile_context>

<pallas_src>
import numpy as np
import jax
import jax.numpy as jnp
from jax.experimental import pallas as pl
from jax.experimental.pallas import tpu as pltpu

# ----------------------------- config ---------------------------------------
IMG_SIZE = 16
FIRST_CONV_CHANNEL_NUM = 8
CONV_K = 3
CONV_PAD = 1
POOL_K = 2
MLP_HIDDEN_LAYER_STRUCT = (32, 10)
BN_EPS = 1e-5

IN_CHANNELS = 4
CONV_HIDDEN_LAYER_NUM = 2
BATCH = 2

# Padded-image / slab geometry.
HP = IMG_SIZE + 2 * CONV_PAD                       # 18
WP = IMG_SIZE + 2 * CONV_PAD                       # 18
S_IMG = ((HP * WP + 127) // 128) * 128             # 384: per-image lane stride
CIN_PAD = 8                                        # conv-1 input channels padded to a sublane tile
N_TAPS = CONV_K * CONV_K                           # 9
K_STACK = N_TAPS * CIN_PAD + 8                     # 80: 72 tap rows + [ones; zeros] bias block
C1 = FIRST_CONV_CHANNEL_NUM                        # 8
C2 = 2 * C1                                        # 16
H1 = MLP_HIDDEN_LAYER_STRUCT[0]                    # 32
OUT_DIM = MLP_HIDDEN_LAYER_STRUCT[1]               # 10
N_POOL = (IMG_SIZE // POOL_K) ** 2                 # 64 avg-pooled positions / image

# Constant-slab layout (72 rows x 128 lanes, f32).
CW_COLS = 128
ROW_CONV1 = 0                                      # rows  0:8
ROW_CONV2 = ROW_CONV1 + C1                         # rows  8:24
ROW_MLP1 = ROW_CONV2 + C2                          # rows 24:56
ROW_MLP2 = ROW_MLP1 + H1                           # rows 56:66
CW_ROWS = ((ROW_MLP2 + OUT_DIM + 7) // 8) * 8      # 72
BIAS_COL = N_TAPS * CIN_PAD                        # 72: conv bias (pairs with the ones row)
SCALE_COL = BIAS_COL + 1                           # 73: eval-BN scale
SHIFT_COL = BIAS_COL + 2                           # 74: eval-BN shift
MLP1_BIAS_COL = C2                                 # 16
MLP2_BIAS_COL = H1                                 # 32


# ----------------------------- Pallas kernel --------------------------------
def _cnn2d_fused_kernel(x_ref, cw_ref, pmat_ref, o_ref, stack_ref):
    """Whole CNN_2D forward in one kernel invocation.

    x_ref    : (8, L)   rows 0:4 input channels, row 4 maxpool-valid mask,
                         rows 5:7 spare (their conv-1 weights are zero).
    cw_ref   : (72, 128) packed conv / BN / MLP constants.
    pmat_ref : (L, N)   avg-pool matrix (1/64 at valid pool lanes per image).
    o_ref    : (10, N)  logits (channels-major; wrapper transposes).
    stack_ref: (80, L)  VMEM scratch holding the 9 shifted copies + bias row.
    """
    L = x_ref.shape[-1]

    def lane_shift(v, off):
        # y[:, p] = v[:, (p + off) mod L]
        if off == 0:
            return v
        return pltpu.roll(v, shift=(-off) % L, axis=1)

    def build_stack(xin, step):
        # 9 lane-shifted copies of the (8, L) activation slab -> stack rows 0:72.
        # `step` = lane spacing of neighbouring pixels (1 dense grid, 2 pooled grid).
        for t in range(N_TAPS):
            di, dj = t // CONV_K, t % CONV_K
            off = ((di - 1) * WP + (dj - 1)) * step
            stack_ref[t * CIN_PAD:(t + 1) * CIN_PAD, :] = lane_shift(xin, off)

    # Rows 72:80 written once: row 72 = ones (folds the conv bias into the MXU
    # contraction), rows 73:79 = zeros (so the BN scale/shift columns of the
    # weight slab contribute nothing to the dot).
    tail = K_STACK - N_TAPS * CIN_PAD
    stack_ref[N_TAPS * CIN_PAD:K_STACK, :] = (
        jax.lax.broadcasted_iota(jnp.int32, (tail, L), 0) == 0).astype(jnp.float32)

    def conv_relu_bn(row0, cout):
        # One (cout, 80) x (80, L) MXU dot = full 3x3 conv + bias for the slab.
        acc = jnp.dot(cw_ref[row0:row0 + cout, 0:K_STACK], stack_ref[...],
                      preferred_element_type=jnp.float32)
        z = jnp.maximum(acc, 0.0)                                        # ReLU
        return (z * cw_ref[row0:row0 + cout, SCALE_COL:SCALE_COL + 1]
                + cw_ref[row0:row0 + cout, SHIFT_COL:SHIFT_COL + 1])     # eval-mode BN

    # ---- conv layer 1: Cin 4 -> 8 on the dense 18x18 padded grid -------------
    build_stack(x_ref[...], step=1)
    z1 = conv_relu_bn(ROW_CONV1, C1)

    # ---- MaxPool2d(2,2): two shift+max passes; keep only pool-output lanes ---
    mp = jnp.maximum(z1, lane_shift(z1, 1))            # max over (j, j+1)
    mp = jnp.maximum(mp, lane_shift(mp, WP))           # max over (i, i+1)
    pooled = mp * x_ref[IN_CHANNELS:IN_CHANNELS + 1, :]  # valid-mask row; zeros = conv-2 padding

    # ---- conv layer 2: 8 -> 16 channels; taps live on the stride-2 grid ------
    build_stack(pooled, step=2)
    z2 = conv_relu_bn(ROW_CONV2, C2)

    # ---- AvgPool2d(8): single MXU dot against the pooling matrix -------------
    feat = jnp.dot(z2, pmat_ref[...], preferred_element_type=jnp.float32)   # (C2, N)

    # ---- MLP head: Linear -> ReLU -> [Dropout = identity] -> Linear ----------
    h = jnp.maximum(
        jnp.dot(cw_ref[ROW_MLP1:ROW_MLP1 + H1, 0:C2], feat,
                preferred_element_type=jnp.float32)
        + cw_ref[ROW_MLP1:ROW_MLP1 + H1, MLP1_BIAS_COL:MLP1_BIAS_COL + 1], 0.0)
    o_ref[...] = (
        jnp.dot(cw_ref[ROW_MLP2:ROW_MLP2 + OUT_DIM, 0:H1], h,
                preferred_element_type=jnp.float32)
        + cw_ref[ROW_MLP2:ROW_MLP2 + OUT_DIM, MLP2_BIAS_COL:MLP2_BIAS_COL + 1])


# ----------------------------- wrapper helpers -------------------------------
def _pool_valid_mask_np(num_imgs):
    """Bool mask over lanes: True at MaxPool output positions (2io+1, 2jo+1)."""
    idx = np.arange(num_imgs * S_IMG)
    rel = idx % S_IMG
    ip, jp = rel // WP, rel % WP
    lim = IMG_SIZE - 1
    return ((rel < HP * WP) & (ip % 2 == 1) & (ip <= lim)
            & (jp % 2 == 1) & (jp <= lim))


def _x_const_rows(num_imgs):
    """Constant rows appended under the real input channels of the x slab."""
    rows = np.zeros((CIN_PAD - IN_CHANNELS, num_imgs * S_IMG), np.float32)
    rows[0, _pool_valid_mask_np(num_imgs)] = 1.0          # maxpool-valid mask
    return jnp.asarray(rows)


def _avgpool_matrix(num_imgs):
    """(L, N) constant: 1/64 at each image's valid pool lanes, else 0."""
    ok = _pool_valid_mask_np(num_imgs)
    idx = np.arange(num_imgs * S_IMG)
    img = idx // S_IMG
    p = np.zeros((num_imgs * S_IMG, num_imgs), np.float32)
    p[idx[ok], img[ok]] = 1.0 / N_POOL
    return jnp.asarray(p)


def _pack_const_slab(params):
    """Pack conv weights (+bias/BN) and MLP layers into one (72, 128) slab."""
    def conv_block(p):
        cout, cin = p["w"].shape[0], p["w"].shape[1]
        wpad = jnp.pad(p["w"], ((0, 0), (0, CIN_PAD - cin), (0, 0), (0, 0)))
        ws = jnp.transpose(wpad, (2, 3, 1, 0)).reshape(N_TAPS * CIN_PAD, cout).T
        scale = p["gamma"] / jnp.sqrt(p["running_var"] + BN_EPS)
        shift = p["beta"] - p["running_mean"] * scale
        blk = jnp.concatenate([ws, p["b"][:, None], scale[:, None], shift[:, None]],
                              axis=1)                                   # (cout, 75)
        return jnp.pad(blk, ((0, 0), (0, CW_COLS - blk.shape[1])))

    def mlp_block(p, rows):
        blk = jnp.concatenate([p["w"], p["b"][:, None]], axis=1)
        return jnp.pad(blk, ((0, rows - blk.shape[0]), (0, CW_COLS - blk.shape[1])))

    c1 = conv_block(params["conv"][0])                    # rows  0:8
    c2 = conv_block(params["conv"][1])                    # rows  8:24
    m1 = mlp_block(params["mlp"][0], H1)                  # rows 24:56
    m2 = mlp_block(params["mlp"][1], CW_ROWS - ROW_MLP2)  # rows 56:72 (10 used)
    return jnp.concatenate([c1, c2, m1, m2], axis=0).astype(jnp.float32)


# ----------------------------- wrapper ---------------------------------------
def cnn2d_forward(x, params):
    """Fused forward of CNN_2D.  x: (N, Cin, H, W) NCHW.  Returns (N, 10)."""
    n, cin, h, w = x.shape
    assert h == IMG_SIZE and w == IMG_SIZE and cin == IN_CHANNELS
    # Lane-roll wraparound safety: per-image pad gap must cover the largest
    # conv-2 tap offset ((WP+1)*2 = 38 <= 60).
    assert S_IMG - HP * WP >= (WP + 1) * POOL_K, "pad gap too small for tap offsets"
    L = n * S_IMG

    # --- activation slab: NCHW -> (8, L) zero-padded flat lanes + mask row ----
    xp = jnp.pad(x, ((0, 0), (0, 0), (CONV_PAD, CONV_PAD), (CONV_PAD, CONV_PAD)))
    xp = jnp.transpose(xp, (1, 0, 2, 3)).reshape(cin, n, HP * WP)
    xp = jnp.pad(xp, ((0, 0), (0, 0), (0, S_IMG - HP * WP))).reshape(cin, L)
    x_slab = jnp.concatenate([xp.astype(jnp.float32), _x_const_rows(n)], axis=0)

    cw = _pack_const_slab(params)      # (72, 128): 1 DMA for all weights/affines
    pmat = _avgpool_matrix(n)          # (L, N) constant pooling matrix

    out_t = pl.pallas_call(
        _cnn2d_fused_kernel,
        out_shape=jax.ShapeDtypeStruct((OUT_DIM, n), jnp.float32),
        grid=(1,),
        in_specs=[pl.BlockSpec(x_slab.shape, lambda i: (0, 0)),
                  pl.BlockSpec(cw.shape, lambda i: (0, 0)),
                  pl.BlockSpec(pmat.shape, lambda i: (0, 0))],
        out_specs=pl.BlockSpec((OUT_DIM, n), lambda i: (0, 0)),
        scratch_shapes=[pltpu.VMEM((K_STACK, L), jnp.float32)],
        compiler_params=pltpu.CompilerParams(
            dimension_semantics=("arbitrary",),
            allow_input_fusion=[True, True, True]),
    )(x_slab, cw, pmat)
    return out_t.T                                        # (N, 10)


# ----------------------------- plain-JAX reference ---------------------------
def cnn2d_reference(x, params):
    """Straightforward reference mirroring the PyTorch module (eval mode)."""
    h = x
    nconv = len(params["conv"])
    for i, p in enumerate(params["conv"]):
        h = jax.lax.conv_general_dilated(
            h, p["w"], window_strides=(1, 1),
            padding=((CONV_PAD, CONV_PAD), (CONV_PAD, CONV_PAD)),
            dimension_numbers=("NCHW", "OIHW", "NCHW"),
            precision=jax.lax.Precision.HIGHEST)
        h = h + p["b"][None, :, None, None]
        h = jnp.maximum(h, 0.0)                                   # ReLU
        scale = p["gamma"] / jnp.sqrt(p["running_var"] + BN_EPS)
        shift = p["beta"] - p["running_mean"] * scale
        h = h * scale[None, :, None, None] + shift[None, :, None, None]
        if i != nconv - 1:
            nn_, cc, hh, ww = h.shape
            h = h.reshape(nn_, cc, hh // 2, 2, ww // 2, 2).max(axis=(3, 5))
        else:
            h = h.mean(axis=(2, 3), keepdims=True)
    h = h.reshape(h.shape[0], -1)
    for i, p in enumerate(params["mlp"]):
        h = jnp.dot(h, p["w"].T, precision=jax.lax.Precision.HIGHEST) + p["b"]
        if i != len(params["mlp"]) - 1:
            h = jnp.maximum(h, 0.0)                               # ReLU (Dropout = id)
    return h


# ----------------------------- parameter init --------------------------------
def init_params(key):
    params = {"conv": [], "mlp": []}
    cin = IN_CHANNELS
    cout = FIRST_CONV_CHANNEL_NUM
    for _ in range(CONV_HIDDEN_LAYER_NUM):
        key, k1, k2 = jax.random.split(key, 3)
        params["conv"].append({
            "w": 0.05 * jax.random.normal(k1, (cout, cin, CONV_K, CONV_K), jnp.float32),
            "b": 0.05 * jax.random.normal(k2, (cout,), jnp.float32),
            "gamma": jnp.ones((cout,), jnp.float32),
            "beta": jnp.zeros((cout,), jnp.float32),
            "running_mean": jnp.zeros((cout,), jnp.float32),
            "running_var": jnp.ones((cout,), jnp.float32),
        })
        cin, cout = cout, cout * 2
    in_dim = cin  # after the global average pool the spatial dims are 1x1
    for out_dim in MLP_HIDDEN_LAYER_STRUCT:
        key, k1, k2 = jax.random.split(key, 3)
        params["mlp"].append({
            "w": 0.05 * jax.random.normal(k1, (out_dim, in_dim), jnp.float32),
            "b": 0.05 * jax.random.normal(k2, (out_dim,), jnp.float32),
        })
        in_dim = out_dim
    return params


# ----------------------------- main ------------------------------------------
if __name__ == "__main__":
    key = jax.random.PRNGKey(0)
    key, xkey = jax.random.split(key)
    x = jax.random.normal(xkey, (BATCH, IN_CHANNELS, IMG_SIZE, IMG_SIZE), jnp.float32)
    params = init_params(key)

    out = jax.jit(cnn2d_forward)(x, params)
    out = jax.block_until_ready(out)
    assert out.shape == (BATCH, MLP_HIDDEN_LAYER_STRUCT[-1]), out.shape
    assert bool(jnp.all(jnp.isfinite(out)))

    ref = cnn2d_reference(x, params)
    np.testing.assert_allclose(np.asarray(out), np.asarray(ref), rtol=3e-2, atol=3e-3)
    print("KERNEL_OK")
</pallas_src>

<mosaic_0001>
module attributes {stable_mosaic.version = 11 : i64} {
  func.func @_cnn2d_fused_kernel(%arg0: i32, %arg1: memref<8x768xf32, #tpu.memory_space<vmem>>, %arg2: memref<72x128xf32, #tpu.memory_space<vmem>>, %arg3: memref<768x2xf32, #tpu.memory_space<vmem>>, %arg4: memref<10x2xf32, #tpu.memory_space<vmem>>, %arg5: memref<80x768xf32, #tpu.memory_space<vmem>>) attributes {dimension_semantics = [#tpu.dimension_semantics<arbitrary>], iteration_bounds = array<i64: 1>, scalar_prefetch = 0 : i64, scratch_operands = 1 : i64, tpu.core_type = #tpu.core_type<tc>, window_params = [{pipeline_mode = #tpu.pipeline_mode<synchronous>, transform_indices = @transform_0, window_bounds = array<i64: 8, 768>}, {pipeline_mode = #tpu.pipeline_mode<synchronous>, transform_indices = @transform_1, window_bounds = array<i64: 72, 128>}, {pipeline_mode = #tpu.pipeline_mode<synchronous>, transform_indices = @transform_2, window_bounds = array<i64: 768, 2>}, {pipeline_mode = #tpu.pipeline_mode<synchronous>, transform_indices = @transform_3, window_bounds = array<i64: 10, 2>}]} {
    %0 = tpu.iota {dimensions = array<i32: 0>} : vector<8x768xi32>
    %c0_i32 = arith.constant 0 : i32
    %1 = vector.broadcast %c0_i32 : i32 to vector<8x768xi32>
    %2 = arith.cmpi eq, %0, %1 : vector<8x768xi32>
    %3 = arith.extui %2 : vector<8x768xi1> to vector<8x768xi32>
    %4 = arith.sitofp %3 : vector<8x768xi32> to vector<8x768xf32>
    %c72 = arith.constant 72 : index
    %c0 = arith.constant 0 : index
    %5 = vector.load %arg5[%c72, %c0] : memref<80x768xf32, #tpu.memory_space<vmem>>, vector<8x768xf32>
    tpu.vector_store %arg5[%c72, %c0], %4 {strides = array<i32>} : memref<80x768xf32, #tpu.memory_space<vmem>>, vector<8x768xf32>,
    %c0_0 = arith.constant 0 : index
    %c0_1 = arith.constant 0 : index
    %6 = vector.load %arg1[%c0_0, %c0_1] : memref<8x768xf32, #tpu.memory_space<vmem>>, vector<8x768xf32>
    %c19_i32 = arith.constant 19 : i32
    %7 = tpu.dynamic_rotate %6 by %c19_i32 dim 1 : vector<8x768xf32>, i32 -> vector<8x768xf32>
    %c0_2 = arith.constant 0 : index
    %c0_3 = arith.constant 0 : index
    %8 = vector.load %arg5[%c0_2, %c0_3] : memref<80x768xf32, #tpu.memory_space<vmem>>, vector<8x768xf32>
    tpu.vector_store %arg5[%c0_2, %c0_3], %7 {strides = array<i32>} : memref<80x768xf32, #tpu.memory_space<vmem>>, vector<8x768xf32>,
    %c18_i32 = arith.constant 18 : i32
    %9 = tpu.dynamic_rotate %6 by %c18_i32 dim 1 : vector<8x768xf32>, i32 -> vector<8x768xf32>
    %c8 = arith.constant 8 : index
    %c0_4 = arith.constant 0 : index
    %10 = vector.load %arg5[%c8, %c0_4] : memref<80x768xf32, #tpu.memory_space<vmem>>, vector<8x768xf32>
    tpu.vector_store %arg5[%c8, %c0_4], %9 {strides = array<i32>} : memref<80x768xf32, #tpu.memory_space<vmem>>, vector<8x768xf32>,
    %c17_i32 = arith.constant 17 : i32
    %11 = tpu.dynamic_rotate %6 by %c17_i32 dim 1 : vector<8x768xf32>, i32 -> vector<8x768xf32>
    %c16 = arith.constant 16 : index
    %c0_5 = arith.constant 0 : index
    %12 = vector.load %arg5[%c16, %c0_5] : memref<80x768xf32, #tpu.memory_space<vmem>>, vector<8x768xf32>
    tpu.vector_store %arg5[%c16, %c0_5], %11 {strides = array<i32>} : memref<80x768xf32, #tpu.memory_space<vmem>>, vector<8x768xf32>,
    %c1_i32 = arith.constant 1 : i32
    %13 = tpu.dynamic_rotate %6 by %c1_i32 dim 1 : vector<8x768xf32>, i32 -> vector<8x768xf32>
    %c24 = arith.constant 24 : index
    %c0_6 = arith.constant 0 : index
    %14 = vector.load %arg5[%c24, %c0_6] : memref<80x768xf32, #tpu.memory_space<vmem>>, vector<8x768xf32>
    tpu.vector_store %arg5[%c24, %c0_6], %13 {strides = array<i32>} : memref<80x768xf32, #tpu.memory_space<vmem>>, vector<8x768xf32>,
    %c32 = arith.constant 32 : index
    %c0_7 = arith.constant 0 : index
    %15 = vector.load %arg5[%c32, %c0_7] : memref<80x768xf32, #tpu.memory_space<vmem>>, vector<8x768xf32>
    tpu.vector_store %arg5[%c32, %c0_7], %6 {strides = array<i32>} : memref<80x768xf32, #tpu.memory_space<vmem>>, vector<8x768xf32>,
    %c767_i32 = arith.constant 767 : i32
    %16 = tpu.dynamic_rotate %6 by %c767_i32 dim 1 : vector<8x768xf32>, i32 -> vector<8x768xf32>
    %c40 = arith.constant 40 : index
    %c0_8 = arith.constant 0 : index
    %17 = vector.load %arg5[%c40, %c0_8] : memref<80x768xf32, #tpu.memory_space<vmem>>, vector<8x768xf32>
    tpu.vector_store %arg5[%c40, %c0_8], %16 {strides = array<i32>} : memref<80x768xf32, #tpu.memory_space<vmem>>, vector<8x768xf32>,
    %c751_i32 = arith.constant 751 : i32
    %18 = tpu.dynamic_rotate %6 by %c751_i32 dim 1 : vector<8x768xf32>, i32 -> vector<8x768xf32>
    %c48 = arith.constant 48 : index
    %c0_9 = arith.constant 0 : index
    %19 = vector.load %arg5[%c48, %c0_9] : memref<80x768xf32, #tpu.memory_space<vmem>>, vector<8x768xf32>
    tpu.vector_store %arg5[%c48, %c0_9], %18 {strides = array<i32>} : memref<80x768xf32, #tpu.memory_space<vmem>>, vector<8x768xf32>,
    %c750_i32 = arith.constant 750 : i32
    %20 = tpu.dynamic_rotate %6 by %c750_i32 dim 1 : vector<8x768xf32>, i32 -> vector<8x768xf32>
    %c56 = arith.constant 56 : index
    %c0_10 = arith.constant 0 : index
    %21 = vector.load %arg5[%c56, %c0_10] : memref<80x768xf32, #tpu.memory_space<vmem>>, vector<8x768xf32>
    tpu.vector_store %arg5[%c56, %c0_10], %20 {strides = array<i32>} : memref<80x768xf32, #tpu.memory_space<vmem>>, vector<8x768xf32>,
    %c749_i32 = arith.constant 749 : i32
    %22 = tpu.dynamic_rotate %6 by %c749_i32 dim 1 : vector<8x768xf32>, i32 -> vector<8x768xf32>
    %c64 = arith.constant 64 : index
    %c0_11 = arith.constant 0 : index
    %23 = vector.load %arg5[%c64, %c0_11] : memref<80x768xf32, #tpu.memory_space<vmem>>, vector<8x768xf32>
    tpu.vector_store %arg5[%c64, %c0_11], %22 {strides = array<i32>} : memref<80x768xf32, #tpu.memory_space<vmem>>, vector<8x768xf32>,
    %c0_12 = arith.constant 0 : index
    %c0_13 = arith.constant 0 : index
    %24 = vector.load %arg2[%c0_12, %c0_13] : memref<72x128xf32, #tpu.memory_space<vmem>>, vector<8x80xf32>
    %c0_14 = arith.constant 0 : index
    %c0_15 = arith.constant 0 : index
    %25 = vector.load %arg5[%c0_14, %c0_15] : memref<80x768xf32, #tpu.memory_space<vmem>>, vector<80x768xf32>
    %cst = arith.constant dense<0.000000e+00> : vector<8x768xf32>
    %26 = tpu.matmul %24, %25, %cst {dimension_numbers = #tpu.dot_dimension_numbers<[1], [0], [0], [1], [0, 0, 1, 1], [], []>} : vector<8x80xf32>, vector<80x768xf32>, vector<8x768xf32> -> vector<8x768xf32>
    %cst_16 = arith.constant 0.000000e+00 : f32
    %27 = vector.broadcast %cst_16 : f32 to vector<8x768xf32>
    %28 = arith.maximumf %26, %27 : vector<8x768xf32>
    %c0_17 = arith.constant 0 : index
    %c73 = arith.constant 73 : index
    %29 = vector.load %arg2[%c0_17, %c73] : memref<72x128xf32, #tpu.memory_space<vmem>>, vector<8x1xf32>
    %30 = vector.broadcast %29 : vector<8x1xf32> to vector<8x768xf32>
    %31 = arith.mulf %28, %30 : vector<8x768xf32>
    %c0_18 = arith.constant 0 : index
    %c74 = arith.constant 74 : index
    %32 = vector.load %arg2[%c0_18, %c74] : memref<72x128xf32, #tpu.memory_space<vmem>>, vector<8x1xf32>
    %33 = vector.broadcast %32 : vector<8x1xf32> to vector<8x768xf32>
    %34 = arith.addf %31, %33 : vector<8x768xf32>
    %c767_i32_19 = arith.constant 767 : i32
    %35 = tpu.dynamic_rotate %34 by %c767_i32_19 dim 1 : vector<8x768xf32>, i32 -> vector<8x768xf32>
    %36 = arith.maximumf %34, %35 : vector<8x768xf32>
    %c750_i32_20 = arith.constant 750 : i32
    %37 = tpu.dynamic_rotate %36 by %c750_i32_20 dim 1 : vector<8x768xf32>, i32 -> vector<8x768xf32>
    %38 = arith.maximumf %36, %37 : vector<8x768xf32>
    %c4 = arith.constant 4 : index
    %c0_21 = arith.constant 0 : index
    %39 = vector.load %arg1[%c4, %c0_21] : memref<8x768xf32, #tpu.memory_space<vmem>>, vector<1x768xf32>
    %40 = vector.broadcast %39 : vector<1x768xf32> to vector<8x768xf32>
    %41 = arith.mulf %38, %40 : vector<8x768xf32>
    %c38_i32 = arith.constant 38 : i32
    %42 = tpu.dynamic_rotate %41 by %c38_i32 dim 1 : vector<8x768xf32>, i32 -> vector<8x768xf32>
    %c0_22 = arith.constant 0 : index
    %c0_23 = arith.constant 0 : index
    %43 = vector.load %arg5[%c0_22, %c0_23] : memref<80x768xf32, #tpu.memory_space<vmem>>, vector<8x768xf32>
    tpu.vector_store %arg5[%c0_22, %c0_23], %42 {strides = array<i32>} : memref<80x768xf32, #tpu.memory_space<vmem>>, vector<8x768xf32>,
    %c36_i32 = arith.constant 36 : i32
    %44 = tpu.dynamic_rotate %41 by %c36_i32 dim 1 : vector<8x768xf32>, i32 -> vector<8x768xf32>
    %c8_24 = arith.constant 8 : index
    %c0_25 = arith.constant 0 : index
    %45 = vector.load %arg5[%c8_24, %c0_25] : memref<80x768xf32, #tpu.memory_space<vmem>>, vector<8x768xf32>
    tpu.vector_store %arg5[%c8_24, %c0_25], %44 {strides = array<i32>} : memref<80x768xf32, #tpu.memory_space<vmem>>, vector<8x768xf32>,
    %c34_i32 = arith.constant 34 : i32
    %46 = tpu.dynamic_rotate %41 by %c34_i32 dim 1 : vector<8x768xf32>, i32 -> vector<8x768xf32>
    %c16_26 = arith.constant 16 : index
    %c0_27 = arith.constant 0 : index
    %47 = vector.load %arg5[%c16_26, %c0_27] : memref<80x768xf32, #tpu.memory_space<vmem>>, vector<8x768xf32>
    tpu.vector_store %arg5[%c16_26, %c0_27], %46 {strides = array<i32>} : memref<80x768xf32, #tpu.memory_space<vmem>>, vector<8x768xf32>,
    %c2_i32 = arith.constant 2 : i32
    %48 = tpu.dynamic_rotate %41 by %c2_i32 dim 1 : vector<8x768xf32>, i32 -> vector<8x768xf32>
    %c24_28 = arith.constant 24 : index
    %c0_29 = arith.constant 0 : index
    %49 = vector.load %arg5[%c24_28, %c0_29] : memref<80x768xf32, #tpu.memory_space<vmem>>, vector<8x768xf32>
    tpu.vector_store %arg5[%c24_28, %c0_29], %48 {strides = array<i32>} : memref<80x768xf32, #tpu.memory_space<vmem>>, vector<8x768xf32>,
    %c32_30 = arith.constant 32 : index
    %c0_31 = arith.constant 0 : index
    %50 = vector.load %arg5[%c32_30, %c0_31] : memref<80x768xf32, #tpu.memory_space<vmem>>, vector<8x768xf32>
    tpu.vector_store %arg5[%c32_30, %c0_31], %41 {strides = array<i32>} : memref<80x768xf32, #tpu.memory_space<vmem>>, vector<8x768xf32>,
    %c766_i32 = arith.constant 766 : i32
    %51 = tpu.dynamic_rotate %41 by %c766_i32 dim 1 : vector<8x768xf32>, i32 -> vector<8x768xf32>
    %c40_32 = arith.constant 40 : index
    %c0_33 = arith.constant 0 : index
    %52 = vector.load %arg5[%c40_32, %c0_33] : memref<80x768xf32, #tpu.memory_space<vmem>>, vector<8x768xf32>
    tpu.vector_store %arg5[%c40_32, %c0_33], %51 {strides = array<i32>} : memref<80x768xf32, #tpu.memory_space<vmem>>, vector<8x768xf32>,
    %c734_i32 = arith.constant 734 : i32
    %53 = tpu.dynamic_rotate %41 by %c734_i32 dim 1 : vector<8x768xf32>, i32 -> vector<8x768xf32>
    %c48_34 = arith.constant 48 : index
    %c0_35 = arith.constant 0 : index
    %54 = vector.load %arg5[%c48_34, %c0_35] : memref<80x768xf32, #tpu.memory_space<vmem>>, vector<8x768xf32>
    tpu.vector_store %arg5[%c48_34, %c0_35], %53 {strides = array<i32>} : memref<80x768xf32, #tpu.memory_space<vmem>>, vector<8x768xf32>,
    %c732_i32 = arith.constant 732 : i32
    %55 = tpu.dynamic_rotate %41 by %c732_i32 dim 1 : vector<8x768xf32>, i32 -> vector<8x768xf32>
    %c56_36 = arith.constant 56 : index
    %c0_37 = arith.constant 0 : index
    %56 = vector.load %arg5[%c56_36, %c0_37] : memref<80x768xf32, #tpu.memory_space<vmem>>, vector<8x768xf32>
    tpu.vector_store %arg5[%c56_36, %c0_37], %55 {strides = array<i32>} : memref<80x768xf32, #tpu.memory_space<vmem>>, vector<8x768xf32>,
    %c730_i32 = arith.constant 730 : i32
    %57 = tpu.dynamic_rotate %41 by %c730_i32 dim 1 : vector<8x768xf32>, i32 -> vector<8x768xf32>
    %c64_38 = arith.constant 64 : index
    %c0_39 = arith.constant 0 : index
    %58 = vector.load %arg5[%c64_38, %c0_39] : memref<80x768xf32, #tpu.memory_space<vmem>>, vector<8x768xf32>
    tpu.vector_store %arg5[%c64_38, %c0_39], %57 {strides = array<i32>} : memref<80x768xf32, #tpu.memory_space<vmem>>, vector<8x768xf32>,
    %c8_40 = arith.constant 8 : index
    %c0_41 = arith.constant 0 : index
    %59 = vector.load %arg2[%c8_40, %c0_41] : memref<72x128xf32, #tpu.memory_space<vmem>>, vector<16x80xf32>
    %c0_42 = arith.constant 0 : index
    %c0_43 = arith.constant 0 : index
    %60 = vector.load %arg5[%c0_42, %c0_43] : memref<80x768xf32, #tpu.memory_space<vmem>>, vector<80x768xf32>
    %cst_44 = arith.constant dense<0.000000e+00> : vector<16x768xf32>
    %61 = tpu.matmul %59, %60, %cst_44 {dimension_numbers = #tpu.dot_dimension_numbers<[1], [0], [0], [1], [0, 0, 1, 1], [], []>} : vector<16x80xf32>, vector<80x768xf32>, vector<16x768xf32> -> vector<16x768xf32>
    %cst_45 = arith.constant 0.000000e+00 : f32
    %62 = vector.broadcast %cst_45 : f32 to vector<16x768xf32>
    %63 = arith.maximumf %61, %62 : vector<16x768xf32>
    %c8_46 = arith.constant 8 : index
    %c73_47 = arith.constant 73 : index
    %64 = vector.load %arg2[%c8_46, %c73_47] : memref<72x128xf32, #tpu.memory_space<vmem>>, vector<16x1xf32>
    %65 = vector.broadcast %64 : vector<16x1xf32> to vector<16x768xf32>
    %66 = arith.mulf %63, %65 : vector<16x768xf32>
    %c8_48 = arith.constant 8 : index
    %c74_49 = arith.constant 74 : index
    %67 = vector.load %arg2[%c8_48, %c74_49] : memref<72x128xf32, #tpu.memory_space<vmem>>, vector<16x1xf32>
    %68 = vector.broadcast %67 : vector<16x1xf32> to vector<16x768xf32>
    %69 = arith.addf %66, %68 : vector<16x768xf32>
    %c0_50 = arith.constant 0 : index
    %c0_51 = arith.constant 0 : index
    %70 = vector.load %arg3[%c0_50, %c0_51] : memref<768x2xf32, #tpu.memory_space<vmem>>, vector<768x2xf32>
    %cst_52 = arith.constant dense<0.000000e+00> : vector<16x2xf32>
    %71 = tpu.matmul %69, %70, %cst_52 {dimension_numbers = #tpu.dot_dimension_numbers<[1], [0], [0], [1], [0, 0, 1, 1], [], []>} : vector<16x768xf32>, vector<768x2xf32>, vector<16x2xf32> -> vector<16x2xf32>
    %c24_53 = arith.constant 24 : index
    %c0_54 = arith.constant 0 : index
    %72 = vector.load %arg2[%c24_53, %c0_54] : memref<72x128xf32, #tpu.memory_space<vmem>>, vector<32x16xf32>
    %cst_55 = arith.constant dense<0.000000e+00> : vector<32x2xf32>
    %73 = tpu.matmul %72, %71, %cst_55 {dimension_numbers = #tpu.dot_dimension_numbers<[1], [0], [0], [1], [0, 0, 1, 1], [], []>} : vector<32x16xf32>, vector<16x2xf32>, vector<32x2xf32> -> vector<32x2xf32>
    %c24_56 = arith.constant 24 : index
    %c16_57 = arith.constant 16 : index
    %74 = vector.load %arg2[%c24_56, %c16_57] : memref<72x128xf32, #tpu.memory_space<vmem>>, vector<32x1xf32>
    %75 = vector.broadcast %74 : vector<32x1xf32> to vector<32x2xf32>
    %76 = arith.addf %73, %75 : vector<32x2xf32>
    %cst_58 = arith.constant 0.000000e+00 : f32
    %77 = vector.broadcast %cst_58 : f32 to vector<32x2xf32>
    %78 = arith.maximumf %76, %77 : vector<32x2xf32>
    %c56_59 = arith.constant 56 : index
    %c0_60 = arith.constant 0 : index
    %79 = vector.load %arg2[%c56_59, %c0_60] : memref<72x128xf32, #tpu.memory_space<vmem>>, vector<10x32xf32>
    %cst_61 = arith.constant dense<0.000000e+00> : vector<10x2xf32>
    %80 = tpu.matmul %79, %78, %cst_61 {dimension_numbers = #tpu.dot_dimension_numbers<[1], [0], [0], [1], [0, 0, 1, 1], [], []>} : vector<10x32xf32>, vector<32x2xf32>, vector<10x2xf32> -> vector<10x2xf32>
    %c56_62 = arith.constant 56 : index
    %c32_63 = arith.constant 32 : index
    %81 = vector.load %arg2[%c56_62, %c32_63] : memref<72x128xf32, #tpu.memory_space<vmem>>, vector<10x1xf32>
    %82 = vector.broadcast %81 : vector<10x1xf32> to vector<10x2xf32>
    %83 = arith.addf %80, %82 : vector<10x2xf32>
    %c0_64 = arith.constant 0 : index
    %c0_65 = arith.constant 0 : index
    %84 = vector.load %arg4[%c0_64, %c0_65] : memref<10x2xf32, #tpu.memory_space<vmem>>, vector<10x2xf32>
    tpu.vector_store %arg4[%c0_64, %c0_65], %83 {strides = array<i32>} : memref<10x2xf32, #tpu.memory_space<vmem>>, vector<10x2xf32>,
    return
  }
  func.func @transform_0(%arg0: i32) -> (i32, i32) {
    %c0_i32 = arith.constant 0 : i32
    %c0_i32_0 = arith.constant 0 : i32
    %c0_i32_1 = arith.constant 0 : i32
    return %c0_i32, %c0_i32_0 : i32, i32
  }
  func.func @transform_1(%arg0: i32) -> (i32, i32) {
    %c0_i32 = arith.constant 0 : i32
    %c0_i32_0 = arith.constant 0 : i32
    %c0_i32_1 = arith.constant 0 : i32
    return %c0_i32, %c0_i32_0 : i32, i32
  }
  func.func @transform_2(%arg0: i32) -> (i32, i32) {
    %c0_i32 = arith.constant 0 : i32
    %c0_i32_0 = arith.constant 0 : i32
    %c0_i32_1 = arith.constant 0 : i32
    return %c0_i32, %c0_i32_0 : i32, i32
  }
  func.func @transform_3(%arg0: i32) -> (i32, i32) {
    %c0_i32 = arith.constant 0 : i32
    %c0_i32_0 = arith.constant 0 : i32
    %c0_i32_1 = arith.constant 0 : i32
    return %c0_i32, %c0_i32_0 : i32, i32
  }
}

</mosaic_0001>

<bundles_post_ra>
// kernel: cnn2d_forward.2
= control target key start
LH: loop header
LB: loop body
LE: loop exit
PB: predicated region body
PF: predicated region fallthrough
CT: control target
= control target key end

     0   :  { %s4002_s0 = inlined_call_operand.vmem [shape: f32[768,2], index: 0, kind: input, shape index: {}]   ;;  %s4003_s1 = inlined_call_operand.vmem [shape: f32[16,128], index: 1, kind: input, shape index: {}]   ;;  %s4004_s2 = inlined_call_operand.<no memory space> [shape: f32[], index: 2, kind: input, shape index: {}]   ;;  %s4005_s3 = inlined_call_operand.vmem [shape: f32[32,128], index: 3, kind: input, shape index: {}]   ;;  %s4006_s4 = inlined_call_operand.vmem [shape: f32[16,128], index: 4, kind: input, shape index: {}]   ;;  %s4007_s5 = inlined_call_operand.vmem [shape: f32[8,128], index: 5, kind: input, shape index: {}]   ;;  %s4008_s6 = inlined_call_operand.vmem [shape: f32[4,768], index: 6, kind: input, shape index: {}]   ;;  %s4009_s7 = inlined_call_operand.vmem [shape: f32[4,768], index: 7, kind: input, shape index: {}]   ;;  %s4010_s8 = inlined_call_operand.vmem [shape: f32[10,2], index: 8, kind: output, shape index: {}]  }
   0x1   :  { %v2870_v0 = vstv %s4004_s2 }
   0x2   :  { %v83_v1 = vlaneseq  ;;  %v2151_v3 = vld [vmem:[%s4008_s6 + $0x8] sm:$0xf]  ;;  %v2157_v5 = vld [vmem:[%s4008_s6 + $0x14] sm:$0xf]  ;;  %v91_v7 = vld [vmem:[%s4009_s7] sm:$0xf] }
   0x3   :  { %v2152_v4 = vld [vmem:[%s4009_s7 + $0x8] sm:$0xf]  ;;  %v2158_v6 = vld [vmem:[%s4009_s7 + $0x14] sm:$0xf]  ;;  %v2150_v8 = vld [vmem:[%s4009_s7 + $0x4] sm:$0xf] }
   0x4   :  { %v2873_v2 = vshrl.u32 %v83_v1, 7  ;;  %v82_v10 = vld [vmem:[%s4008_s6] sm:$0xf]  ;;  %v2149_v11 = vld [vmem:[%s4008_s6 + $0x4] sm:$0xf]  ;;  %vm88_vm1 = vcmask 1043456  }
   0x5   :  { %v2153_v20 = vld [vmem:[%s4008_s6 + $0xc] sm:$0xf]  ;;  %v2155_v21 = vld [vmem:[%s4008_s6 + $0x10] sm:$0xf]  ;;  %s2800_s29 = smov 18   ;;  %s2801_s30 = smov 1  }
   0x6   :  { %v85_v9 = vadd.s32 8, %v2873_v2  ;;  %vm95_vm0 = vcmp.lt.s32.totalorder %v2873_v2, 4  ;;  %v2154_v30 = vld [vmem:[%s4009_s7 + $0xc] sm:$0xf]  ;;  %v2156_v33 = vld [vmem:[%s4009_s7 + $0x10] sm:$0xf] }
   0x7   :  { %v155_v12 = vsel %vm95_vm0, %v2152_v4, %v2870_v0  ;;  %v245_v13 = vsel %vm95_vm0, %v2158_v6, %v2870_v0  ;;  %v96_v14 = vsel %vm95_vm0, %v91_v7, %v2870_v0  ;;  %v125_v15 = vsel %vm95_vm0, %v2150_v8, %v2870_v0  ;;  %s2799_s7 = smov 19   ;;  %s2802_s9 = smov 17   ;;  %v253_v49 = vld [vmem:[%s4007_s5] sm:$0xff] }
   0x8   :  { %vm86_vm2 = vcmp.lt.s32.totalorder %v85_v9, 12  ;;  %v185_v39 = vsel %vm95_vm0, %v2154_v30, %v2870_v0  ;;  %v215_v44 = vsel %vm95_vm0, %v2156_v33, %v2870_v0  ;;  %s2803_s10 = smov 127   ;;  %v256_v50 = vmax.f32 %v253_v49, %v2870_v0  ;;  %s2804_s13 = smov 110  }
   0x9   :  { %v145_v16 = vsel %vm86_vm2, %v2151_v3, %v2870_v0  ;;  %v235_v17 = vsel %vm86_vm2, %v2157_v5, %v2870_v0  ;;  %v87_v18 = vsel %vm86_vm2, %v82_v10, %v2870_v0  ;;  %v115_v19 = vsel %vm86_vm2, %v2149_v11, %v2870_v0  ;;  %s2805_s14 = smov 111   ;;  %s2807_s5 = smov 109  }
   0xa   :  { %v147_v22 = vsel %vm88_vm1, %v145_v16, %v2870_v0  ;;  %v237_v23 = vsel %vm88_vm1, %v235_v17, %v2870_v0  ;;  %v89_v24 = vsel %vm88_vm1, %v87_v18, %v2870_v0  ;;  %v117_v25 = vsel %vm88_vm1, %v115_v19, %v2870_v0  ;;  %s2813_s18 = smov 38   ;;  %s2814_s19 = smov 2  }
   0xb   :  { %v148_v26 = vrot.slane %v147_v22, 4  ;;  %v238_v27 = vrot.slane %v237_v23, 4  ;;  %v90_v28 = vrot.slane %v89_v24, 4  ;;  %v118_v29 = vrot.slane %v117_v25, 4  ;;  %s2815_s20 = smov 34   ;;  %s2816_s21 = smov 126  }
   0xc   :  { %v175_v31 = vsel %vm86_vm2, %v2153_v20, %v2870_v0  ;;  %v205_v32 = vsel %vm86_vm2, %v2155_v21, %v2870_v0  ;;  %v260_v51 = vmax.f32 %v256_v50, %v2870_v0  ;;  %v2806_v53 = vmov 0.0   ;;  %s2817_s22 = smov 92   ;;  %s2818_s23 = smov 94  }
   0xd   :  { %v2945_v34 = vmax.f32 %v155_v12, %v148_v26  ;;  %v2947_v35 = vmax.f32 %v245_v13, %v238_v27  ;;  %v2949_v36 = vmax.f32 %v96_v14, %v90_v28  ;;  %v2951_v37 = vmax.f32 %v125_v15, %v118_v29  ;;  %766 = vmatprep.mubr.f32.mxu0 %v2806_v53  ;;  %s2819_s24 = smov 90  }
   0xe   :  { %v177_v38 = vsel %vm88_vm1, %v175_v31, %v2870_v0  ;;  %v207_v40 = vsel %vm88_vm1, %v205_v32, %v2870_v0  ;;  %v2991_v52 = vmax.f32 %v260_v51, %v2870_v0  ;;  %837 = vmatprep.mubr.f32.mxu1 %v2806_v53  ;;  %v2808_v55 = vmov 73  }
   0xf   :  { %162 = vst [vmem:[#allocation33 + $0x10] sm:$0xff] %v2945_v34  ;;  %252 = vst [vmem:[#allocation33 + $0x28] sm:$0xff] %v2947_v35  ;;  %v2618_v41 = vpack.i.bf16 %v2945_v34, %v2947_v35  ;;  %v2608_v42 = vpack.i.bf16 %v2951_v37, %v2949_v36  ;;  %v178_v43 = vrot.slane %v177_v38, 4  ;;  %v208_v45 = vrot.slane %v207_v40, 4  ;;  %2708 = vset.pattern.permute.xlu0 %v2808_v55 }
  0x10   :  { %102 = vst [vmem:[#allocation33] sm:$0xff] %v2949_v36  ;;  %132 = vst [vmem:[#allocation33 + $0x8] sm:$0xff] %v2951_v37  ;;  %v2648_v48 = vpack.i.bf16 %v2945_v34, %v2951_v37  ;;  %v2809_v56 = vmov 74   ;;  %v3013_v57 = vand.u32 127, %v83_v1  ;;  %vm414_vm11 = vcmp.eq.s32.totalorder %v2873_v2, 0 }
  0x11   :  { %2619 = vrot.lane.b32.xlu1 %v2618_v41, %s2799_s7  ;;  %2609 = vrot.lane.b32.xlu0 %v2608_v42, %s2799_s7  ;;  %v2973_v46 = vmax.f32 %v185_v39, %v178_v43  ;;  %v2975_v47 = vmax.f32 %v215_v44, %v208_v45  ;;  %vm2810_vm12 = vmmov 1   ;;  %vm698_vm14 = vcmask 654336  }
  0x12   :  { %2709 = vset.pattern.permute.xlu1 %v2809_v56  ;;  %vm443_vm3 = vcmp.lt.s32.totalorder %v3013_v57, 19  ;;  %vm468_vm4 = vcmp.lt.s32.totalorder %v3013_v57, 18  ;;  %vm493_vm5 = vcmp.lt.s32.totalorder %v3013_v57, 17  ;;  %vm518_vm6 = vcmp.lt.s32.totalorder %v3013_v57, 1  ;;  %vm3142_vm13 = vmpackc.low %vm414_vm11, %vm2810_vm12 }
  0x13   :  { %192 = vst [vmem:[#allocation33 + $0x18] sm:$0xff] %v2973_v46  ;;  %222 = vst [vmem:[#allocation33 + $0x20] sm:$0xff] %v2975_v47  ;;  %v2673_v54 = vpack.i.bf16 %v2975_v47, %v2973_v46  ;;  %vm549_vm7 = vcmp.lt.s32.totalorder %v3013_v57, 127  ;;  %vm599_vm8 = vcmp.lt.s32.totalorder %v3013_v57, 110  ;;  %vm574_vm9 = vcmp.lt.s32.totalorder %v3013_v57, 111 }
  0x14   :  { %vm624_vm10 = vcmp.lt.s32.totalorder %v3013_v57, 109  ;;  %vm1042_vm15 = vcmp.lt.s32.totalorder %v3013_v57, 38  ;;  %vm1067_vm0 = vcmp.lt.s32.totalorder %v3013_v57, 36  ;;  %vm1117_vm1 = vcmp.lt.s32.totalorder %v3013_v57, 2 }
  0x15   :  { %2624 = vrot.lane.b32.xlu1 %v2618_v41, %s2800_s29  ;;  %2614 = vrot.lane.b32.xlu0 %v2608_v42, %s2800_s29  ;;  %vm1092_vm2 = vcmp.lt.s32.totalorder %v3013_v57, 34 }
  0x19   :  { %2634 = vrot.lane.b32.xlu1 %v2608_v42, %s2801_s30  ;;  %2629 = vrot.lane.b32.xlu0 %v2608_v42, %s2802_s9 }
  0x1d   :  { %2644 = vrot.lane.b32.xlu1 %v2618_v41, %s2801_s30  ;;  %2639 = vrot.lane.b32.xlu0 %v2618_v41, %s2802_s9 }
  0x21   :  { %537 = vrot.lane.b32.xlu1 %v2949_v36, %s2803_s10  ;;  %2649 = vrot.lane.b32.xlu0 %v2648_v48, %s2803_s10 }
  0x25   :  { %2659 = vrot.lane.b32.xlu1 %v2648_v48, %s2804_s13  ;;  %2654 = vrot.lane.b32.xlu0 %v2648_v48, %s2805_s14 }
  0x29   :  { %587 = vrot.lane.b32.xlu1 %v2949_v36, %s2804_s13  ;;  %562 = vrot.lane.b32.xlu0 %v2949_v36, %s2805_s14 }
  0x2d   :  { %612 = vrot.lane.b32.xlu1 %v2949_v36, %s2807_s5  ;;  %2664 = vrot.lane.b32.xlu0 %v2648_v48, %s2807_s5 }
  0x31   :  { %2674 = vrot.lane.b32.xlu1 %v2673_v54, %s2800_s29  ;;  %2669 = vrot.lane.b32.xlu0 %v2673_v54, %s2799_s7 }
  0x35   :  { %2684 = vrot.lane.b32.xlu1 %v2673_v54, %s2801_s30  ;;  %2679 = vrot.lane.b32.xlu0 %v2673_v54, %s2802_s9 }
  0x39   :  { %547 = vrot.lane.b32.xlu1 %v2947_v35, %s2803_s10  ;;  %2689 = vrot.lane.b32.xlu0 %v2673_v54, %s2803_s10 }
  0x3d   :  { %2699 = vrot.lane.b32.xlu1 %v2673_v54, %s2804_s13  ;;  %2694 = vrot.lane.b32.xlu0 %v2673_v54, %s2805_s14 }
  0x41   :  { %597 = vrot.lane.b32.xlu1 %v2947_v35, %s2804_s13  ;;  %572 = vrot.lane.b32.xlu0 %v2947_v35, %s2805_s14 }
  0x45   :  { %622 = vrot.lane.b32.xlu1 %v2947_v35, %s2807_s5  ;;  %2704 = vrot.lane.b32.xlu0 %v2673_v54, %s2807_s5 }
  0x49   :  { %922 = vperm.xlu0 %2708, %v2991_v52   ;;  %932 = vperm.xlu1 %2709, %v2991_v52  }
  0x83   :  { %v3015_v58 = vpop.permute.xlu1 %2619  ;;  %v3017_v59 = vpop.permute.xlu0 %2609 }
  0x84   :  { %v2621_v60 = vunpack.i.l.bf16 %v3015_v58  ;;  %v2612_v61 = vunpack.i.h.bf16 %v3017_v59  ;;  %v2611_v62 = vunpack.i.l.bf16 %v3017_v59 }
  0x86   :  { %v448_v6 = vsel %vm443_vm3, %v2611_v62, %v2612_v61  ;;  %v449_v8 = vsel %vm443_vm3, %v2621_v60, %v2611_v62  ;;  %v2622_v62 = vunpack.i.h.bf16 %v3015_v58 }
  0x87   :  { %v3022_v63 = vpop.permute.xlu1 %2624  ;;  %v3024_v3 = vpop.permute.xlu0 %2614 }
  0x88   :  { %v2626_v1 = vunpack.i.l.bf16 %v3022_v63  ;;  %v2617_v4 = vunpack.i.h.bf16 %v3024_v3  ;;  %v2616_v5 = vunpack.i.l.bf16 %v3024_v3  ;;  %v2627_v56 = vunpack.i.h.bf16 %v3022_v63 }
  0x8a   :  { %v473_v7 = vsel %vm468_vm4, %v2616_v5, %v2617_v4  ;;  %v474_v9 = vsel %vm468_vm4, %v2626_v1, %v2616_v5 }
  0x8b   :  { %v3047_v10 = vpop.permute.xlu1 %2634  ;;  %v3049_v11 = vpop.permute.xlu0 %2629  ;;  %v2345_v12 = vpack.c.bf16 %v473_v7, %v448_v6  ;;  %v2347_v13 = vpack.c.bf16 %v474_v9, %v449_v8 }
  0x8c   :  { %v2637_v14 = vunpack.i.h.bf16 %v3047_v10  ;;  %v2636_v15 = vunpack.i.l.bf16 %v3047_v10  ;;  %v2632_v16 = vunpack.i.h.bf16 %v3049_v11  ;;  %v2631_v17 = vunpack.i.l.bf16 %v3049_v11 }
  0x8d   :  { %2346 = vmatprep.subr.bf16.mxu0 %v2345_v12 }
  0x8e   :  { %2348 = vmatpush1.bf16.msra.mxu0 %v2347_v13  ;;  %v498_v18 = vsel %vm493_vm5, %v2631_v17, %v2632_v16  ;;  %v523_v19 = vsel %vm518_vm6, %v2636_v15, %v2637_v14 }
  0x8f   :  { %v3065_v20 = vpop.permute.xlu1 %2644  ;;  %v3067_v21 = vpop.permute.xlu0 %2639  ;;  %v2349_v22 = vpack.c.bf16 %v523_v19, %v498_v18  ;;  %v472_v18 = vsel %vm468_vm4, %v2617_v4, %v2627_v56  ;;  %v2811_v19 = vmov 1.0  }
  0x90   :  { %v2646_v23 = vunpack.i.l.bf16 %v3065_v20  ;;  %v2641_v24 = vunpack.i.l.bf16 %v3067_v21  ;;  %v2647_v9 = vunpack.i.h.bf16 %v3065_v20  ;;  %v2642_v12 = vunpack.i.h.bf16 %v3067_v21 }
  0x91   :  { %2350 = vmatprep.subr.bf16.mxu0 %v2349_v22 }
  0x92   :  { %v499_v25 = vsel %vm493_vm5, %v2641_v24, %v2631_v17  ;;  %v524_v26 = vsel %vm518_vm6, %v2646_v23, %v2636_v15  ;;  %v497_v4 = vsel %vm493_vm5, %v2632_v16, %v2642_v12  ;;  %v522_v59 = vsel %vm518_vm6, %v2637_v14, %v2647_v9 }
  0x93   :  { %v3079_v27 = vpop.permute.xlu1 %537  ;;  %v3081_v28 = vpop.permute.xlu0 %2649  ;;  %v2351_v29 = vpack.c.bf16 %v524_v26, %v499_v25 }
  0x94   :  { %v2652_v30 = vunpack.i.h.bf16 %v3081_v28  ;;  %v2651_v31 = vunpack.i.l.bf16 %v3081_v28 }
  0x95   :  { %2352 = vmatpush1.bf16.msra.mxu0 %v2351_v29 }
  0x96   :  { %v553_v32 = vsel %vm549_vm7, %v2651_v31, %v2652_v30  ;;  %v554_v33 = vsel %vm549_vm7, %v3079_v27, %v2651_v31  ;;  %v447_v31 = vsel %vm443_vm3, %v2612_v61, %v2622_v62 }
  0x97   :  { %v3093_v38 = vpop.permute.xlu1 %2659  ;;  %v3095_v39 = vpop.permute.xlu0 %2654  ;;  %v2353_v40 = vpack.c.bf16 %v553_v32, %v2951_v37  ;;  %v2355_v41 = vpack.c.bf16 %v554_v33, %v2949_v36  ;;  %v2369_v3 = vpack.c.bf16 %v472_v18, %v447_v31 }
  0x98   :  { %v2662_v42 = vunpack.i.h.bf16 %v3093_v38  ;;  %v2661_v43 = vunpack.i.l.bf16 %v3093_v38  ;;  %v2657_v44 = vunpack.i.h.bf16 %v3095_v39  ;;  %v2656_v45 = vunpack.i.l.bf16 %v3095_v39 }
  0x99   :  { %2354 = vmatprep.subr.bf16.mxu0 %v2353_v40 }
  0x9a   :  { %2356 = vmatpush1.bf16.msra.mxu0 %v2355_v41  ;;  %v578_v37 = vsel %vm574_vm9, %v2656_v45, %v2657_v44  ;;  %v603_v36 = vsel %vm599_vm8, %v2661_v43, %v2662_v42 }
  0x9b   :  { %v3113_v48 = vpop.permute.xlu1 %587  ;;  %v3115_v49 = vpop.permute.xlu0 %562  ;;  %v2357_v50 = vpack.c.bf16 %v603_v36, %v578_v37 }
  0x9c   :  { %v604_v51 = vsel %vm599_vm8, %v3113_v48, %v2661_v43  ;;  %v579_v54 = vsel %vm574_vm9, %v3115_v49, %v2656_v45 }
  0x9d   :  { %v2359_v55 = vpack.c.bf16 %v604_v51, %v579_v54  ;;  %2358 = vmatprep.subr.bf16.mxu0 %v2357_v50 }
  0x9f   :  { %v3125_v5 = vpop.permute.xlu1 %612  ;;  %v3128_v6 = vpop.permute.xlu0 %2664  ;;  %2360 = vmatpush1.bf16.msra.mxu0 %v2359_v55 }
  0xa0   :  { %v2667_v7 = vunpack.i.h.bf16 %v3128_v6  ;;  %v2666_v8 = vunpack.i.l.bf16 %v3128_v6 }
  0xa2   :  { %v628_v13 = vsel %vm624_vm10, %v2666_v8, %v2667_v7  ;;  %v629_v15 = vsel %vm624_vm10, %v3125_v5, %v2666_v8  ;;  %v2373_v8 = vpack.c.bf16 %v522_v59, %v497_v4 }
  0xa3   :  { %v2361_v22 = vpack.c.bf16 %v2811_v19, %v628_v13  ;;  %v2364_v25 = vpack.c.bf16 %v2811_v19, %v629_v15  ;;  %v2675_v26 = vpop.permute.xlu1 %2674  ;;  %v2670_v29 = vpop.permute.xlu0 %2669 }
  0xa4   :  { %v2677_v32 = vunpack.i.h.bf16 %v2675_v26  ;;  %v2676_v33 = vunpack.i.l.bf16 %v2675_v26  ;;  %v2672_v40 = vunpack.i.h.bf16 %v2670_v29  ;;  %v2671_v41 = vunpack.i.l.bf16 %v2670_v29 }
  0xa5   :  { %2363 = vmatprep.subr.msk.bf16.mxu0 %vm3142_vm13, %v2361_v22 }
  0xa6   :  { %v470_v61 = vsel %vm468_vm4, %v2676_v33, %v2677_v32  ;;  %v445_v43 = vsel %vm443_vm3, %v2671_v41, %v2672_v40  ;;  %2366 = vmatpush1.bf16.msk.msra.mxu0 %vm3142_vm13, %v2364_v25  ;;  %v446_v11 = vsel %vm443_vm3, %v2622_v62, %v2671_v41  ;;  %v471_v16 = vsel %vm468_vm4, %v2627_v56, %v2676_v33 }
  0xa7   :  { %v2391_v45 = vpack.c.bf16 %v470_v61, %v445_v43  ;;  %v2685_v10 = vpop.permute.xlu1 %2684  ;;  %v2680_v37 = vpop.permute.xlu0 %2679  ;;  %v2367_v36 = vpack.c.bf16 %v471_v16, %v446_v11  ;;  %v444_v14 = vsel %vm443_vm3, %v2672_v40, %v2621_v60  ;;  %v469_v50 = vsel %vm468_vm4, %v2677_v32, %v2626_v1 }
  0xa8   :  { %v2687_v51 = vunpack.i.h.bf16 %v2685_v10  ;;  %v2686_v54 = vunpack.i.l.bf16 %v2685_v10  ;;  %v2682_v55 = vunpack.i.h.bf16 %v2680_v37  ;;  %v2681_v62 = vunpack.i.l.bf16 %v2680_v37 }
  0xa9   :  { %2171 = vmatmul.mubr.msk.f32.vlgmr.msra.gmra.mrb[0].mxu0 %vm698_vm14, %v2991_v52  ;;  %2368 = vmatprep.subr.bf16.mxu1 %v2367_v36  ;;  %v2389_v56 = vpack.c.bf16 %v469_v50, %v444_v14  ;;  %vm1148_vm3 = vcmp.lt.s32.totalorder %v3013_v57, 126  ;;  %vm1198_vm4 = vcmp.lt.s32.totalorder %v3013_v57, 92 }
  0xaa   :  { %v520_v58 = vsel %vm518_vm6, %v2686_v54, %v2687_v51  ;;  %v495_v60 = vsel %vm493_vm5, %v2681_v62, %v2682_v55  ;;  %2370 = vmatpush1.bf16.msra.mxu1 %v2369_v3  ;;  %v496_v63 = vsel %vm493_vm5, %v2642_v12, %v2681_v62  ;;  %v521_v1 = vsel %vm518_vm6, %v2647_v9, %v2686_v54 }
  0xab   :  { %v2395_v13 = vpack.c.bf16 %v520_v58, %v495_v60  ;;  %2390 = vmatprep.subr.bf16.mxu0 %v2389_v56  ;;  %v548_v15 = vpop.permute.xlu1 %547  ;;  %v2690_v18 = vpop.permute.xlu0 %2689  ;;  %v2371_v22 = vpack.c.bf16 %v521_v1, %v496_v63  ;;  %v494_v25 = vsel %vm493_vm5, %v2682_v55, %v2641_v24  ;;  %v519_v26 = vsel %vm518_vm6, %v2687_v51, %v2646_v23 }
  0xac   :  { %2392 = vmatpush1.bf16.msra.mxu0 %v2391_v45  ;;  %v555_v9 = vsel %vm549_vm7, %v548_v15, %v3079_v27  ;;  %v2692_v12 = vunpack.i.h.bf16 %v2690_v18  ;;  %v2691_v29 = vunpack.i.l.bf16 %v2690_v18  ;;  %v2393_v31 = vpack.c.bf16 %v519_v26, %v494_v25  ;;  %908 = vmatprep.mubr.f32.mxu0 %v2806_v53 }
  0xad   :  { %v2397_v21 = vpack.c.bf16 %v555_v9, %v2947_v35  ;;  %2372 = vmatprep.subr.bf16.mxu1 %v2371_v22  ;;  %vm1173_vm5 = vcmp.lt.s32.totalorder %v3013_v57, 94  ;;  %vm1223_vm6 = vcmp.lt.s32.totalorder %v3013_v57, 90 }
  0xae   :  { %v550_v24 = vsel %vm549_vm7, %v2692_v12, %v548_v15  ;;  %2394 = vmatprep.subr.bf16.mxu0 %v2393_v31  ;;  %2374 = vmatpush1.bf16.msra.mxu1 %v2373_v8  ;;  %v551_v20 = vsel %vm549_vm7, %v2691_v29, %v2692_v12  ;;  %v552_v23 = vsel %vm549_vm7, %v2652_v30, %v2691_v29 }
  0xaf   :  { %v2399_v27 = vpack.c.bf16 %v550_v24, %v2975_v47  ;;  %v2700_v32 = vpop.permute.xlu1 %2699  ;;  %v2695_v33 = vpop.permute.xlu0 %2694  ;;  %v2375_v35 = vpack.c.bf16 %v551_v20, %v2973_v46  ;;  %v2377_v40 = vpack.c.bf16 %v552_v23, %v2945_v34 }
  0xb0   :  { %2396 = vmatpush1.bf16.msra.mxu0 %v2395_v13  ;;  %v2702_v41 = vunpack.i.h.bf16 %v2700_v32  ;;  %v2701_v3 = vunpack.i.l.bf16 %v2700_v32  ;;  %v2697_v4 = vunpack.i.h.bf16 %v2695_v33  ;;  %v2696_v59 = vunpack.i.l.bf16 %v2695_v33 }
  0xb1   :  { %2398 = vmatprep.subr.bf16.mxu0 %v2397_v21  ;;  %2376 = vmatprep.subr.bf16.mxu1 %v2375_v35 }
  0xb2   :  { %2378 = vmatpush1.bf16.msra.mxu1 %v2377_v40  ;;  %v576_v28 = vsel %vm574_vm9, %v2696_v59, %v2697_v4  ;;  %v601_v47 = vsel %vm599_vm8, %v2701_v3, %v2702_v41  ;;  %v577_v46 = vsel %vm574_vm9, %v2657_v44, %v2696_v59  ;;  %v602_v34 = vsel %vm599_vm8, %v2662_v42, %v2701_v3 }
  0xb3   :  { %v598_v30 = vpop.permute.xlu1 %597  ;;  %v573_v61 = vpop.permute.xlu0 %572  ;;  %v2379_v43 = vpack.c.bf16 %v601_v47, %v576_v28  ;;  %v2381_v11 = vpack.c.bf16 %v602_v34, %v577_v46 }
  0xb4   :  { %2400 = vmatpush1.bf16.msra.mxu0 %v2399_v27  ;;  %v600_v16 = vsel %vm599_vm8, %v2702_v41, %v598_v30  ;;  %v605_v39 = vsel %vm599_vm8, %v598_v30, %v3113_v48  ;;  %v575_v44 = vsel %vm574_vm9, %v2697_v4, %v573_v61  ;;  %v580_v38 = vsel %vm574_vm9, %v573_v61, %v3115_v49 }
  0xb5   :  { %v2401_v42 = vpack.c.bf16 %v605_v39, %v580_v38  ;;  %v2403_v45 = vpack.c.bf16 %v600_v16, %v575_v44  ;;  %2380 = vmatprep.subr.bf16.mxu1 %v2379_v43  ;;  %vm2124_vm9 = vcmask 9216  }
  0xb6   :  { %2382 = vmatpush1.bf16.msra.mxu1 %v2381_v11 }
  0xb7   :  { %v623_v10 = vpop.permute.xlu1 %622  ;;  %v2705_v37 = vpop.permute.xlu0 %2704  ;;  %2402 = vmatprep.subr.bf16.mxu0 %v2401_v42  ;;  %v2160_v42 = vld [vmem:[%s4006_s4] sm:$0xff] }
  0xb8   :  { %v630_v36 = vsel %vm624_vm10, %v623_v10, %v3125_v5  ;;  %v2707_v14 = vunpack.i.h.bf16 %v2705_v37  ;;  %v2706_v48 = vunpack.i.l.bf16 %v2705_v37  ;;  %2404 = vmatpush1.bf16.msra.mxu0 %v2403_v45  ;;  %v274_v45 = vmax.f32 %v2870_v0, %v2160_v42  ;;  %v2161_v37 = vld [vmem:[%s4006_s4 + $0x8] sm:$0xff]  ;;  %s2812_s4 = smov 36  }
  0xb9   :  { %v2405_v50 = vpack.c.bf16 %v2811_v19, %v630_v36 }
  0xba   :  { %v625_v51 = vsel %vm624_vm10, %v2707_v14, %v623_v10  ;;  %v626_v49 = vsel %vm624_vm10, %v2706_v48, %v2707_v14  ;;  %v627_v54 = vsel %vm624_vm10, %v2667_v7, %v2706_v48  ;;  %v278_v10 = vmax.f32 %v274_v45, %v2870_v0 }
  0xbb   :  { %v2408_v55 = vpack.c.bf16 %v2811_v19, %v625_v51  ;;  %v2383_v5 = vpack.c.bf16 %v2811_v19, %v626_v49  ;;  %v2386_v62 = vpack.c.bf16 %v2811_v19, %v627_v54  ;;  %2407 = vmatprep.subr.msk.bf16.mxu0 %vm3142_vm13, %v2405_v50  ;;  %v293_v14 = vmax.f32 %v2870_v0, %v2161_v37  ;;  %v990_v51 = vld [vmem:[#allocation33 + $0x4] ss:$8 sm:$0xf] }
  0xbc   :  { %v3308_v36 = vmax.f32 %v278_v10, %v2870_v0  ;;  %v991_v49 = vld [vmem:[#allocation33 + $0x4] ss:$8 sm:$0x30]  ;;  %vm2122_vm10 = vcmask 15360  }
  0xbd   :  { %2385 = vmatprep.subr.msk.bf16.mxu1 %vm3142_vm13, %v2383_v5  ;;  %2410 = vmatpush1.bf16.msk.msra.mxu0 %vm3142_vm13, %v2408_v55  ;;  %v297_v48 = vmax.f32 %v293_v14, %v2870_v0  ;;  %v992_v54 = vor.u32 %v991_v49, %v990_v51  ;;  %v996_v55 = vsub.s32 0, %v2873_v2 }
  0xbe   :  { %2388 = vmatpush1.bf16.msk.msra.mxu1 %vm3142_vm13, %v2386_v62  ;;  %v1000_v62 = vsub.s32 1, %v2873_v2 }
  0xbf   :  { %v3313_v50 = vmax.f32 %v297_v48, %v2870_v0 }
  0xc0   :  { %2173 = vmatmul.mubr.msk.f32.vlgmr.msra.gmra.mrb[2].mxu0 %vm698_vm14, %v2991_v52 }
  0xc1   :  { %2172 = vmatmul.mubr.msk.f32.vlgmr.msra.gmra.mrb[0].mxu1 %vm698_vm14, %v2991_v52  ;;  %1445 = vmatprep.mubr.f32.mxu0 %v2806_v53 }
  0xc2   :  { %1368 = vmatprep.mubr.f32.mxu1 %v2806_v53 }
  0xc8   :  { %v923_v7 = vpop.permute.xlu0 %922  ;;  %v933_v60 = vpop.permute.xlu1 %932 }
 0x17c   :  { %v768_v6 = vpop.f32.mrb[0].mxu0 }
 0x17d   :  { %v915_v56 = vmax.f32 %v768_v6, 0.0  ;;  %v770_v8 = vpop.f32.mrb[1].mxu0  ;;  %v997_v6 = vrot.slane %v992_v54, %v996_v55 }
 0x17e   :  { %v916_v58 = vmax.f32 %v770_v8, 0.0  ;;  %v1001_v8 = vrot.slane %v992_v54, %v1000_v62 }
 0x17f   :  { %v925_v63 = vmul.f32 %v923_v7, %v915_v56 }
 0x180   :  { %v926_v1 = vmul.f32 %v923_v7, %v916_v58 }
 0x181   :  { %v935_v13 = vadd.f32 %v933_v60, %v925_v63 }
 0x182   :  { %v936_v15 = vadd.f32 %v933_v60, %v926_v1 }
 0x183   :  { %941 = vrot.lane.b32.xlu1 %v935_v13, %s2803_s10 }
 0x184   :  { %943 = vrot.lane.b32.xlu0 %v936_v15, %s2803_s10 }
 0x193   :  { %v910_v18 = vpop.f32.mrb[2].mxu0 }
 0x194   :  { %v839_v52 = vpop.f32.mrb[0].mxu1  ;;  %v912_v22 = vpop.f32.mrb[3].mxu0  ;;  %v919_v12 = vmax.f32 %v910_v18, 0.0 }
 0x195   :  { %v917_v25 = vmax.f32 %v839_v52, 0.0  ;;  %v920_v26 = vmax.f32 %v912_v22, 0.0  ;;  %v841_v9 = vpop.f32.mrb[1].mxu1 }
 0x196   :  { %v918_v29 = vmax.f32 %v841_v9, 0.0  ;;  %v929_v23 = vmul.f32 %v923_v7, %v919_v12 }
 0x197   :  { %v927_v31 = vmul.f32 %v923_v7, %v917_v25  ;;  %v930_v24 = vmul.f32 %v923_v7, %v920_v26  ;;  %v1016_v26 = vsub.s32 5, %v2873_v2 }
 0x198   :  { %v928_v21 = vmul.f32 %v923_v7, %v918_v29  ;;  %v939_v33 = vadd.f32 %v933_v60, %v929_v23 }
 0x199   :  { %v937_v20 = vadd.f32 %v933_v60, %v927_v31  ;;  %v940_v32 = vadd.f32 %v933_v60, %v930_v24 }
 0x19a   :  { %v938_v27 = vadd.f32 %v933_v60, %v928_v21  ;;  %v1017_v21 = vrot.slane %v992_v54, %v1016_v26 }
 0x19b   :  { %945 = vrot.lane.b32.xlu1 %v937_v20, %s2803_s10 }
 0x19c   :  { %947 = vrot.lane.b32.xlu0 %v938_v27, %s2803_s10 }
 0x19f   :  { %951 = vrot.lane.b32.xlu1 %v940_v32, %s2803_s10 }
 0x1a0   :  { %949 = vrot.lane.b32.xlu0 %v939_v33, %s2803_s10 }
 0x1f5   :  { %v942_v35 = vpop.permute.xlu1 %941 }
 0x1f6   :  { %v944_v40 = vpop.permute.xlu0 %943 }
 0x1f7   :  { %v957_v41 = vsel %vm549_vm7, %v942_v35, %v944_v40 }
 0x1f8   :  { %v959_v3 = vmax.f32 %v935_v13, %v957_v41  ;;  %v1004_v13 = vsub.s32 2, %v2873_v2 }
 0x1fa   :  { %965 = vrot.lane.b32.xlu1 %v959_v3, %s2804_s13  ;;  %v1005_v9 = vrot.slane %v992_v54, %v1004_v13 }
 0x20d   :  { %v946_v4 = vpop.permute.xlu1 %945 }
 0x20e   :  { %v956_v59 = vsel %vm549_vm7, %v944_v40, %v946_v4  ;;  %v948_v28 = vpop.permute.xlu0 %947  ;;  %v1012_v40 = vsub.s32 4, %v2873_v2 }
 0x20f   :  { %v960_v47 = vmax.f32 %v936_v15, %v956_v59  ;;  %v955_v46 = vsel %vm549_vm7, %v946_v4, %v948_v28 }
 0x210   :  { %v961_v34 = vmax.f32 %v937_v20, %v955_v46  ;;  %v1013_v59 = vrot.slane %v992_v54, %v1012_v40 }
 0x211   :  { %967 = vrot.lane.b32.xlu0 %v960_v47, %s2804_s13  ;;  %v952_v30 = vpop.permute.xlu1 %951 }
 0x212   :  { %v958_v61 = vsel %vm549_vm7, %v952_v30, %v942_v35  ;;  %v950_v43 = vpop.permute.xlu0 %949  ;;  %969 = vrot.lane.b32.xlu1 %v961_v34, %s2804_s13  ;;  %v1008_v35 = vsub.s32 3, %v2873_v2 }
 0x213   :  { %v964_v11 = vmax.f32 %v940_v32, %v958_v61  ;;  %v954_v16 = vsel %vm549_vm7, %v948_v28, %v950_v43  ;;  %v953_v39 = vsel %vm549_vm7, %v950_v43, %v952_v30  ;;  %vm1932_vm7 = vcmask 130048  }
 0x214   :  { %v3290_v44 = vmax.f32 %v938_v27, %v954_v16  ;;  %v3295_v38 = vmax.f32 %v939_v33, %v953_v39  ;;  %v1009_v4 = vrot.slane %v992_v54, %v1008_v35 }
 0x215   :  { %975 = vrot.lane.b32.xlu0 %v964_v11, %s2804_s13 }
 0x216   :  { %971 = vrot.lane.b32.xlu1 %v3290_v44, %s2804_s13 }
 0x219   :  { %973 = vrot.lane.b32.xlu0 %v3295_v38, %s2804_s13 }
 0x26c   :  { %v966_v5 = vpop.permute.xlu1 %965 }
 0x283   :  { %v968_v7 = vpop.permute.xlu0 %967 }
 0x284   :  { %v981_v56 = vsel %vm599_vm8, %v966_v5, %v968_v7  ;;  %v970_v58 = vpop.permute.xlu1 %969 }
 0x285   :  { %v983_v60 = vmax.f32 %v959_v3, %v981_v56  ;;  %v980_v63 = vsel %vm599_vm8, %v968_v7, %v970_v58 }
 0x286   :  { %v984_v1 = vmax.f32 %v960_v47, %v980_v63 }
 0x287   :  { %v3322_v15 = vmul.f32 %v997_v6, %v983_v60  ;;  %v976_v52 = vpop.permute.xlu0 %975 }
 0x288   :  { %v3324_v18 = vmul.f32 %v1001_v8, %v984_v1  ;;  %v972_v22 = vpop.permute.xlu1 %971  ;;  %v982_v31 = vsel %vm599_vm8, %v976_v52, %v966_v5 }
 0x289   :  { %v979_v25 = vsel %vm599_vm8, %v970_v58, %v972_v22  ;;  %v988_v24 = vmax.f32 %v964_v11, %v982_v31 }
 0x28a   :  { %v985_v12 = vmax.f32 %v961_v34, %v979_v25  ;;  %v2715_v29 = vpack.i.bf16 %v3324_v18, %v3322_v15 }
 0x28b   :  { %v3339_v23 = vmul.f32 %v1017_v21, %v988_v24  ;;  %v974_v33 = vpop.permute.xlu0 %973 }
 0x28c   :  { %2716 = vrot.lane.b32.xlu0 %v2715_v29, %s2812_s4  ;;  %2711 = vrot.lane.b32.xlu1 %v2715_v29, %s2813_s18  ;;  %v3335_v20 = vmul.f32 %v1005_v9, %v985_v12  ;;  %v977_v41 = vsel %vm599_vm8, %v974_v33, %v976_v52  ;;  %v978_v3 = vsel %vm599_vm8, %v972_v22, %v974_v33  ;;  %vm2042_vm8 = vcmask 261120  }
 0x28d   :  { %v986_v28 = vmax.f32 %v3290_v44, %v978_v3  ;;  %v987_v47 = vmax.f32 %v3295_v38, %v977_v41 }
 0x28e   :  { %v2730_v27 = vpack.i.bf16 %v3335_v20, %v3324_v18  ;;  %v2735_v32 = vpack.i.bf16 %v3335_v20, %v3339_v23 }
 0x28f   :  { %v3367_v2 = vmul.f32 %v1009_v4, %v986_v28  ;;  %v3369_v46 = vmul.f32 %v1013_v59, %v987_v47 }
 0x290   :  { %2726 = vrot.lane.b32.xlu0 %v2715_v29, %s2814_s19  ;;  %2721 = vrot.lane.b32.xlu1 %v2715_v29, %s2815_s20 }
 0x291   :  { %v2760_v34 = vpack.i.bf16 %v3367_v2, %v3335_v20  ;;  %v2755_v30 = vpack.i.bf16 %v3369_v46, %v3367_v2 }
 0x294   :  { %1136 = vrot.lane.b32.xlu0 %v3322_v15, %s2816_s21  ;;  %2731 = vrot.lane.b32.xlu1 %v2730_v27, %s2816_s21 }
 0x298   :  { %1065 = vrot.lane.b32.xlu0 %v3339_v23, %s2812_s4  ;;  %2736 = vrot.lane.b32.xlu1 %v2735_v32, %s2813_s18 }
 0x29c   :  { %1115 = vrot.lane.b32.xlu0 %v3339_v23, %s2814_s19  ;;  %1090 = vrot.lane.b32.xlu1 %v3339_v23, %s2815_s20 }
 0x2a0   :  { %2746 = vrot.lane.b32.xlu0 %v2730_v27, %s2817_s22  ;;  %2741 = vrot.lane.b32.xlu1 %v2730_v27, %s2818_s23 }
 0x2a4   :  { %1186 = vrot.lane.b32.xlu0 %v3322_v15, %s2817_s22  ;;  %1161 = vrot.lane.b32.xlu1 %v3322_v15, %s2818_s23 }
 0x2a8   :  { %1211 = vrot.lane.b32.xlu0 %v3322_v15, %s2819_s24  ;;  %2751 = vrot.lane.b32.xlu1 %v2730_v27, %s2819_s24 }
 0x2ac   :  { %2761 = vrot.lane.b32.xlu0 %v2760_v34, %s2812_s4  ;;  %2756 = vrot.lane.b32.xlu1 %v2755_v30, %s2813_s18 }
 0x2b0   :  { %2766 = vrot.lane.b32.xlu0 %v2760_v34, %s2815_s20  ;;  %1063 = vrot.lane.b32.xlu1 %v3369_v46, %s2812_s4 }
 0x2b4   :  { %1088 = vrot.lane.b32.xlu0 %v3369_v46, %s2815_s20  ;;  %2771 = vrot.lane.b32.xlu1 %v2760_v34, %s2814_s19 }
 0x2b8   :  { %2776 = vrot.lane.b32.xlu0 %v2755_v30, %s2816_s21  ;;  %1113 = vrot.lane.b32.xlu1 %v3369_v46, %s2814_s19 }
 0x2bc   :  { %2781 = vrot.lane.b32.xlu0 %v2755_v30, %s2818_s23  ;;  %1146 = vrot.lane.b32.xlu1 %v3339_v23, %s2816_s21 }
 0x2c0   :  { %1171 = vrot.lane.b32.xlu0 %v3339_v23, %s2818_s23  ;;  %2786 = vrot.lane.b32.xlu1 %v2755_v30, %s2817_s22 }
 0x2c4   :  { %2791 = vrot.lane.b32.xlu0 %v2755_v30, %s2819_s24  ;;  %1196 = vrot.lane.b32.xlu1 %v3339_v23, %s2817_s22 }
 0x2c8   :  { %1548 = vperm.xlu0 %2708, %v3308_v36   ;;  %1221 = vrot.lane.b32.xlu1 %v3339_v23, %s2819_s24 }
 0x2cc   :  { %1552 = vperm.xlu0 %2708, %v3313_v50   ;;  %1568 = vperm.xlu1 %2709, %v3308_v36  }
 0x2d0   :  { %1572 = vperm.xlu1 %2709, %v3313_v50  }
 0x2fe   :  { %v3398_v61 = vpop.permute.xlu0 %2716  ;;  %v3400_v43 = vpop.permute.xlu1 %2711 }
 0x2ff   :  { %v2719_v11 = vunpack.i.h.bf16 %v3398_v61  ;;  %v2718_v16 = vunpack.i.l.bf16 %v3398_v61  ;;  %v2714_v39 = vunpack.i.h.bf16 %v3400_v43  ;;  %v2713_v44 = vunpack.i.l.bf16 %v3400_v43 }
 0x301   :  { %v1047_v38 = vsel %vm1042_vm15, %v2713_v44, %v2714_v39  ;;  %v1072_v42 = vsel %vm1067_vm0, %v2718_v16, %v2719_v11 }
 0x302   :  { %v3416_v45 = vpop.permute.xlu0 %2726  ;;  %v3418_v10 = vpop.permute.xlu1 %2721  ;;  %v2411_v37 = vpack.c.bf16 %v1072_v42, %v1047_v38 }
 0x303   :  { %v2729_v51 = vunpack.i.h.bf16 %v3416_v45  ;;  %v2728_v49 = vunpack.i.l.bf16 %v3416_v45  ;;  %v2724_v54 = vunpack.i.h.bf16 %v3418_v10  ;;  %v2723_v55 = vunpack.i.l.bf16 %v3418_v10 }
 0x304   :  { %2412 = vmatprep.subr.bf16.mxu1 %v2411_v37 }
 0x305   :  { %v1097_v8 = vsel %vm1092_vm2, %v2723_v55, %v2724_v54  ;;  %v1122_v58 = vsel %vm1117_vm1, %v2728_v49, %v2729_v51 }
 0x306   :  { %v3420_v14 = vpop.permute.xlu0 %1136  ;;  %v3422_v48 = vpop.permute.xlu1 %2731  ;;  %v2415_v26 = vpack.c.bf16 %v1122_v58, %v1097_v8 }
 0x307   :  { %v2734_v6 = vunpack.i.h.bf16 %v3422_v48  ;;  %v2733_v7 = vunpack.i.l.bf16 %v3422_v48 }
 0x309   :  { %v1152_v9 = vsel %vm1148_vm3, %v2733_v7, %v2734_v6  ;;  %v1153_v12 = vsel %vm1148_vm3, %v3420_v14, %v2733_v7 }
 0x30a   :  { %v3430_v5 = vpop.permute.xlu0 %1065  ;;  %v3432_v62 = vpop.permute.xlu1 %2736  ;;  %v2419_v24 = vpack.c.bf16 %v1152_v9, %v3324_v18  ;;  %v2421_v41 = vpack.c.bf16 %v1153_v12, %v3322_v15 }
 0x30b   :  { %v2738_v56 = vunpack.i.l.bf16 %v3432_v62  ;;  %v1073_v60 = vsel %vm1067_vm0, %v3430_v5, %v2718_v16  ;;  %v2739_v37 = vunpack.i.h.bf16 %v3432_v62 }
 0x30d   :  { %v1048_v63 = vsel %vm1042_vm15, %v2738_v56, %v2713_v44 }
 0x30e   :  { %v2413_v1 = vpack.c.bf16 %v1073_v60, %v1048_v63  ;;  %v3453_v13 = vpop.permute.xlu0 %1115  ;;  %v3455_v52 = vpop.permute.xlu1 %1090 }
 0x30f   :  { %v1123_v22 = vsel %vm1117_vm1, %v3453_v13, %v2728_v49  ;;  %v1098_v25 = vsel %vm1092_vm2, %v3455_v52, %v2723_v55 }
 0x310   :  { %2414 = vmatpush1.bf16.msra.mxu1 %v2413_v1  ;;  %v2417_v29 = vpack.c.bf16 %v1123_v22, %v1098_v25 }
 0x311   :  { %2416 = vmatprep.subr.bf16.mxu1 %v2415_v26  ;;  %v1046_v26 = vsel %vm1042_vm15, %v2714_v39, %v2739_v37 }
 0x312   :  { %v3471_v31 = vpop.permute.xlu0 %2746  ;;  %v3473_v21 = vpop.permute.xlu1 %2741 }
 0x313   :  { %v2749_v27 = vunpack.i.h.bf16 %v3471_v31  ;;  %v2748_v32 = vunpack.i.l.bf16 %v3471_v31  ;;  %v2744_v33 = vunpack.i.h.bf16 %v3473_v21  ;;  %v2743_v35 = vunpack.i.l.bf16 %v3473_v21 }
 0x314   :  { %2418 = vmatpush1.bf16.msra.mxu1 %v2417_v29 }
 0x315   :  { %2420 = vmatprep.subr.bf16.mxu1 %v2419_v24  ;;  %v1177_v40 = vsel %vm1173_vm5, %v2743_v35, %v2744_v33  ;;  %v1202_v18 = vsel %vm1198_vm4, %v2748_v32, %v2749_v27 }
 0x316   :  { %v3490_v3 = vpop.permute.xlu0 %1186  ;;  %v3492_v4 = vpop.permute.xlu1 %1161  ;;  %v2423_v59 = vpack.c.bf16 %v1202_v18, %v1177_v40 }
 0x317   :  { %v1203_v28 = vsel %vm1198_vm4, %v3490_v3, %v2748_v32  ;;  %v1178_v47 = vsel %vm1173_vm5, %v3492_v4, %v2743_v35 }
 0x318   :  { %2422 = vmatpush1.bf16.msra.mxu1 %v2421_v41  ;;  %v2425_v34 = vpack.c.bf16 %v1203_v28, %v1178_v47 }
 0x319   :  { %2424 = vmatprep.subr.bf16.mxu1 %v2423_v59 }
 0x31a   :  { %v3500_v30 = vpop.permute.xlu0 %1211  ;;  %v3503_v15 = vpop.permute.xlu1 %2751 }
 0x31b   :  { %v2754_v16 = vunpack.i.h.bf16 %v3503_v15  ;;  %v2753_v44 = vunpack.i.l.bf16 %v3503_v15 }
 0x31c   :  { %2426 = vmatpush1.bf16.msra.mxu1 %v2425_v34 }
 0x31d   :  { %v1227_v38 = vsel %vm1223_vm6, %v2753_v44, %v2754_v16  ;;  %v1228_v42 = vsel %vm1223_vm6, %v3500_v30, %v2753_v44 }
 0x31e   :  { %v2427_v49 = vpack.c.bf16 %v2811_v19, %v1227_v38  ;;  %v2430_v55 = vpack.c.bf16 %v2811_v19, %v1228_v42  ;;  %v2762_v7 = vpop.permute.xlu0 %2761  ;;  %v2757_v8 = vpop.permute.xlu1 %2756 }
 0x31f   :  { %v2764_v58 = vunpack.i.h.bf16 %v2762_v7  ;;  %v2763_v60 = vunpack.i.l.bf16 %v2762_v7  ;;  %v2759_v63 = vunpack.i.h.bf16 %v2757_v8  ;;  %v2758_v1 = vunpack.i.l.bf16 %v2757_v8 }
 0x320   :  { %2429 = vmatprep.subr.msk.bf16.mxu1 %vm3142_vm13, %v2427_v49 }
 0x321   :  { %v1071_v22 = vsel %vm1067_vm0, %v2719_v11, %v2763_v60  ;;  %2432 = vmatpush1.bf16.msk.msra.mxu1 %vm3142_vm13, %v2430_v55  ;;  %v1045_v25 = vsel %vm1042_vm15, %v2739_v37, %v2758_v1  ;;  %v1043_v61 = vsel %vm1042_vm15, %v2759_v63, %v2738_v56  ;;  %v1070_v11 = vsel %vm1067_vm0, %v2763_v60, %v2764_v58 }
 0x322   :  { %v2767_v9 = vpop.permute.xlu0 %2766  ;;  %v1064_v12 = vpop.permute.xlu1 %1063  ;;  %v2435_v29 = vpack.c.bf16 %v1071_v22, %v1046_v26  ;;  %v1044_v24 = vsel %vm1042_vm15, %v2758_v1, %v2759_v63  ;;  %v2433_v62 = vpack.c.bf16 %v1070_v11, %v1045_v25 }
 0x323   :  { %v1068_v43 = vsel %vm1067_vm0, %v1064_v12, %v3430_v5  ;;  %v1069_v39 = vsel %vm1067_vm0, %v2764_v58, %v1064_v12  ;;  %v2769_v56 = vunpack.i.h.bf16 %v2767_v9  ;;  %v2768_v40 = vunpack.i.l.bf16 %v2767_v9 }
 0x324   :  { %v2455_v32 = vpack.c.bf16 %v1068_v43, %v1043_v61  ;;  %v2457_v35 = vpack.c.bf16 %v1069_v39, %v1044_v24  ;;  %2174 = vmatmul.mubr.msk.f32.vlgmr.msra.gmra.mrb[2].mxu1 %vm698_vm14, %v3308_v36  ;;  %2434 = vmatprep.subr.bf16.mxu0 %v2433_v62 }
 0x325   :  { %1374 = vmatprep.mubr.f32.mxu1 %v2806_v53  ;;  %2436 = vmatpush1.bf16.msra.mxu0 %v2435_v29  ;;  %v1096_v28 = vsel %vm1092_vm2, %v2724_v54, %v2768_v40  ;;  %v1095_v34 = vsel %vm1092_vm2, %v2768_v40, %v2769_v56 }
 0x326   :  { %v1089_v18 = vpop.permute.xlu0 %1088  ;;  %v2772_v41 = vpop.permute.xlu1 %2771  ;;  %2456 = vmatprep.subr.bf16.mxu1 %v2455_v32 }
 0x327   :  { %v2774_v59 = vunpack.i.h.bf16 %v2772_v41  ;;  %v2773_v5 = vunpack.i.l.bf16 %v2772_v41  ;;  %2458 = vmatpush1.bf16.msra.mxu1 %v2457_v35  ;;  %v1093_v10 = vsel %vm1092_vm2, %v1089_v18, %v3455_v52  ;;  %v1094_v54 = vsel %vm1092_vm2, %v2769_v56, %v1089_v18  ;;  %v1603_v56 = vld [vmem:[%s4002_s0 + $0x80] sm:$0xff] }
 0x328   :  { %2175 = vmatmul.mubr.msk.f32.gmra.mrb[4].mxu1 %vm698_vm14, %v3313_v50 }
 0x329   :  { %v1121_v47 = vsel %vm1117_vm1, %v2729_v51, %v2773_v5  ;;  %v1120_v44 = vsel %vm1117_vm1, %v2773_v5, %v2774_v59  ;;  %1522 = vmatprep.mubr.f32.mxu1 %v2806_v53 }
 0x32a   :  { %v2439_v38 = vpack.c.bf16 %v1121_v47, %v1096_v28  ;;  %v2777_v45 = vpop.permute.xlu0 %2776  ;;  %v1114_v42 = vpop.permute.xlu1 %1113  ;;  %v2437_v37 = vpack.c.bf16 %v1120_v44, %v1095_v34  ;;  %v1587_v34 = vld [vmem:[%s4002_s0] sm:$0xff]  ;;  %v1588_v44 = vld [vmem:[%s4002_s0 + $0x8] sm:$0xff] }
 0x32b   :  { %v2779_v51 = vunpack.i.h.bf16 %v2777_v45  ;;  %v2778_v49 = vunpack.i.l.bf16 %v2777_v45  ;;  %v1118_v55 = vsel %vm1117_vm1, %v1114_v42, %v3453_v13  ;;  %v1119_v7 = vsel %vm1117_vm1, %v2774_v59, %v1114_v42  ;;  %v1589_v42 = vld [vmem:[%s4002_s0 + $0x10] sm:$0xff] }
 0x32c   :  { %v2459_v8 = vpack.c.bf16 %v1118_v55, %v1093_v10  ;;  %v2461_v58 = vpack.c.bf16 %v1119_v7, %v1094_v54  ;;  %2438 = vmatprep.subr.bf16.mxu0 %v2437_v37  ;;  %v1605_v10 = vld [vmem:[%s4002_s0 + $0x90] sm:$0xff]  ;;  %v1606_v54 = vld [vmem:[%s4002_s0 + $0x98] sm:$0xff]  ;;  %v2479_v57 = vpack.c.bf16 %v1588_v44, %v1587_v34  ;;  %v1607_v37 = vld [vmem:[%s4002_s0 + $0xa0] sm:$0xff] }
 0x32d   :  { %v1151_v52 = vsel %vm1148_vm3, %v2734_v6, %v2778_v49  ;;  %2440 = vmatpush1.bf16.msra.mxu0 %v2439_v38  ;;  %v1150_v60 = vsel %vm1148_vm3, %v2778_v49, %v2779_v51  ;;  %v1591_v55 = vld [vmem:[%s4002_s0 + $0x20] sm:$0xff]  ;;  %v1592_v7 = vld [vmem:[%s4002_s0 + $0x28] sm:$0xff] }
 0x32e   :  { %v2443_v63 = vpack.c.bf16 %v1151_v52, %v3335_v20  ;;  %v2782_v1 = vpop.permute.xlu0 %2781  ;;  %v1147_v22 = vpop.permute.xlu1 %1146  ;;  %2460 = vmatprep.subr.bf16.mxu1 %v2459_v8  ;;  %v2441_v13 = vpack.c.bf16 %v1150_v60, %v3367_v2  ;;  %v1609_v8 = vld [vmem:[%s4002_s0 + $0xb0] sm:$0xff]  ;;  %v1594_v60 = vld [vmem:[%s4002_s0 + $0x38] sm:$0xff]  ;;  %v1639_v44 = vld [vmem:[%s4002_s0 + $0x1a0] sm:$0xff] }
 0x32f   :  { %v1149_v25 = vsel %vm1148_vm3, %v2779_v51, %v1147_v22  ;;  %v1154_v48 = vsel %vm1148_vm3, %v1147_v22, %v3420_v14  ;;  %2462 = vmatpush1.bf16.msra.mxu1 %v2461_v58  ;;  %v2784_v9 = vunpack.i.h.bf16 %v2782_v1  ;;  %v2783_v20 = vunpack.i.l.bf16 %v2782_v1  ;;  %v1608_v51 = vld [vmem:[%s4002_s0 + $0xa8] sm:$0xff] }
 0x330   :  { %v2463_v6 = vpack.c.bf16 %v1154_v48, %v3339_v23  ;;  %v2465_v26 = vpack.c.bf16 %v1149_v25, %v3369_v46  ;;  %2442 = vmatprep.subr.bf16.mxu0 %v2441_v13  ;;  %v2485_v17 = vpack.c.bf16 %v1608_v51, %v1607_v37  ;;  %v2487_v58 = vpack.c.bf16 %v1592_v7, %v1591_v55  ;;  %v1612_v1 = vld [vmem:[%s4002_s0 + $0xc8] sm:$0xff]  ;;  %v1595_v13 = vld [vmem:[%s4002_s0 + $0x40] sm:$0xff]  ;;  %v1613_v48 = vld [vmem:[%s4002_s0 + $0xd0] sm:$0xff] }
 0x331   :  { %2444 = vmatpush1.bf16.msra.mxu0 %v2443_v63  ;;  %v1176_v14 = vsel %vm1173_vm5, %v2744_v33, %v2783_v20  ;;  %v1175_v46 = vsel %vm1173_vm5, %v2783_v20, %v2784_v9  ;;  %v1611_v63 = vld [vmem:[%s4002_s0 + $0xc0] sm:$0xff]  ;;  %v1596_v25 = vld [vmem:[%s4002_s0 + $0x48] sm:$0xff]  ;;  %v1597_v20 = vld [vmem:[%s4002_s0 + $0x50] sm:$0xff] }
 0x332   :  { %v1172_v12 = vpop.permute.xlu0 %1171  ;;  %v2787_v61 = vpop.permute.xlu1 %2786  ;;  %2464 = vmatprep.subr.bf16.mxu1 %v2463_v6  ;;  %v2493_v22 = vpack.c.bf16 %v1612_v1, %v1611_v63  ;;  %v1614_v6 = vld [vmem:[%s4002_s0 + $0xd8] sm:$0xff]  ;;  %v1643_v51 = vld [vmem:[%s4002_s0 + $0x1c0] sm:$0xff]  ;;  %v1628_v7 = vld [vmem:[%s4002_s0 + $0x148] sm:$0xff] }
 0x333   :  { %v2789_v2 = vunpack.i.h.bf16 %v2787_v61  ;;  %v2788_v11 = vunpack.i.l.bf16 %v2787_v61  ;;  %2466 = vmatpush1.bf16.msra.mxu1 %v2465_v26  ;;  %v1174_v24 = vsel %vm1173_vm5, %v2784_v9, %v1172_v12  ;;  %v1179_v21 = vsel %vm1173_vm5, %v1172_v12, %v3492_v4  ;;  %v1604_v4 = vld [vmem:[%s4002_s0 + $0x88] sm:$0xff]  ;;  %v1598_v12 = vld [vmem:[%s4002_s0 + $0x58] sm:$0xff]  ;;  %v1627_v55 = vld [vmem:[%s4002_s0 + $0x140] sm:$0xff] }
 0x334   :  { %v2477_v47 = vpack.c.bf16 %v1604_v4, %v1603_v56  ;;  %v2495_v26 = vpack.c.bf16 %v1596_v25, %v1595_v13  ;;  %v2497_v9 = vpack.c.bf16 %v1614_v6, %v1613_v48  ;;  %v2499_v61 = vpack.c.bf16 %v1598_v12, %v1597_v20  ;;  %v1647_v1 = vld [vmem:[%s4002_s0 + $0x1e0] sm:$0xff]  ;;  %v1632_v25 = vld [vmem:[%s4002_s0 + $0x168] sm:$0xff]  ;;  %v1649_v6 = vld [vmem:[%s4002_s0 + $0x1f0] sm:$0xff] }
 0x335   :  { %v1201_v23 = vsel %vm1198_vm4, %v2749_v27, %v2788_v11  ;;  %v1200_v29 = vsel %vm1198_vm4, %v2788_v11, %v2789_v2  ;;  %v1616_v11 = vld [vmem:[%s4002_s0 + $0xe8] sm:$0xff]  ;;  %v1631_v13 = vld [vmem:[%s4002_s0 + $0x160] sm:$0xff]  ;;  %v1633_v20 = vld [vmem:[%s4002_s0 + $0x170] sm:$0xff] }
 0x336   :  { %v2447_v43 = vpack.c.bf16 %v1201_v23, %v1176_v14  ;;  %v2792_v33 = vpop.permute.xlu0 %2791  ;;  %v1197_v39 = vpop.permute.xlu1 %1196  ;;  %v2445_v31 = vpack.c.bf16 %v1200_v29, %v1175_v46  ;;  %v1599_v23 = vld [vmem:[%s4002_s0 + $0x60] sm:$0xff]  ;;  %v1600_v46 = vld [vmem:[%s4002_s0 + $0x68] sm:$0xff]  ;;  %v2535_v48 = vpack.c.bf16 %v1632_v25, %v1631_v13  ;;  %v1634_v12 = vld [vmem:[%s4002_s0 + $0x178] sm:$0xff] }
 0x337   :  { %v2794_v32 = vunpack.i.h.bf16 %v2792_v33  ;;  %v2793_v35 = vunpack.i.l.bf16 %v2792_v33  ;;  %v1199_v27 = vsel %vm1198_vm4, %v2789_v2, %v1197_v39  ;;  %v1204_v62 = vsel %vm1198_vm4, %v1197_v39, %v3490_v3  ;;  %v1615_v2 = vld [vmem:[%s4002_s0 + $0xe0] sm:$0xff]  ;;  %v1601_v33 = vld [vmem:[%s4002_s0 + $0x70] sm:$0xff]  ;;  %v1602_v39 = vld [vmem:[%s4002_s0 + $0x78] sm:$0xff] }
 0x338   :  { %v2467_v40 = vpack.c.bf16 %v1204_v62, %v1179_v21  ;;  %v2469_v18 = vpack.c.bf16 %v1199_v27, %v1174_v24  ;;  %2446 = vmatprep.subr.bf16.mxu0 %v2445_v31  ;;  %v2501_v14 = vpack.c.bf16 %v1616_v11, %v1615_v2  ;;  %v2503_v29 = vpack.c.bf16 %v1600_v46, %v1599_v23  ;;  %v1617_v24 = vld [vmem:[%s4002_s0 + $0xf0] sm:$0xff]  ;;  %v1618_v21 = vld [vmem:[%s4002_s0 + $0xf8] sm:$0xff]  ;;  %v1635_v31 = vld [vmem:[%s4002_s0 + $0x180] sm:$0xff] }
 0x339   :  { %v1225_v41 = vsel %vm1223_vm6, %v2793_v35, %v2794_v32  ;;  %v1226_v59 = vsel %vm1223_vm6, %v2754_v16, %v2793_v35  ;;  %2448 = vmatpush1.bf16.msra.mxu0 %v2447_v43  ;;  %v2505_v43 = vpack.c.bf16 %v1618_v21, %v1617_v24  ;;  %v1636_v35 = vld [vmem:[%s4002_s0 + $0x188] sm:$0xff]  ;;  %v1619_v27 = vld [vmem:[%s4002_s0 + $0x100] sm:$0xff] }
 0x33a   :  { %v2449_v3 = vpack.c.bf16 %v2811_v19, %v1225_v41  ;;  %v2452_v5 = vpack.c.bf16 %v2811_v19, %v1226_v59  ;;  %v1222_v28 = vpop.permute.xlu1 %1221  ;;  %2468 = vmatprep.subr.bf16.mxu1 %v2467_v40  ;;  %v1620_v62 = vld [vmem:[%s4002_s0 + $0x108] sm:$0xff]  ;;  %v2509_v56 = vpack.c.bf16 %v1636_v35, %v1635_v31  ;;  %v1667_v40 = vld [vmem:[%s4002_s0 + $0x280] sm:$0xff]  ;;  %v1637_v59 = vld [vmem:[%s4002_s0 + $0x190] sm:$0xff] }
 0x33b   :  { %v1224_v15 = vsel %vm1223_vm6, %v2794_v32, %v1222_v28  ;;  %v1229_v16 = vsel %vm1223_vm6, %v1222_v28, %v3500_v30  ;;  %2470 = vmatpush1.bf16.msra.mxu1 %v2469_v18  ;;  %v2481_v30 = vpack.c.bf16 %v1606_v54, %v1605_v10  ;;  %v2507_v32 = vpack.c.bf16 %v1602_v39, %v1601_v33  ;;  %v1668_v18 = vld [vmem:[%s4002_s0 + $0x288] sm:$0xff]  ;;  %v1621_v28 = vld [vmem:[%s4002_s0 + $0x110] sm:$0xff]  ;;  %v1623_v10 = vld [vmem:[%s4002_s0 + $0x120] sm:$0xff] }
 0x33c   :  { %v2471_v38 = vpack.c.bf16 %v2811_v19, %v1229_v16  ;;  %v2474_v45 = vpack.c.bf16 %v2811_v19, %v1224_v15  ;;  %2451 = vmatprep.subr.msk.bf16.mxu0 %vm3142_vm13, %v2449_v3  ;;  %v1590_v19 = vld [vmem:[%s4002_s0 + $0x18] sm:$0xff]  ;;  %v2511_v4 = vpack.c.bf16 %v1620_v62, %v1619_v27  ;;  %v2541_v41 = vpack.c.bf16 %v1668_v18, %v1667_v40  ;;  %v1640_v15 = vld [vmem:[%s4002_s0 + $0x1a8] sm:$0xff]  ;;  %v1651_v21 = vld [vmem:[%s4002_s0 + $0x200] sm:$0xff] }
 0x33d   :  { %2454 = vmatpush1.bf16.msk.msra.mxu0 %vm3142_vm13, %v2452_v5  ;;  %v2483_v49 = vpack.c.bf16 %v1590_v19, %v1589_v42  ;;  %v1638_v3 = vld [vmem:[%s4002_s0 + $0x198] sm:$0xff]  ;;  %v2517_v16 = vpack.c.bf16 %v1640_v15, %v1639_v44  ;;  %v1624_v54 = vld [vmem:[%s4002_s0 + $0x128] sm:$0xff]  ;;  %v1625_v42 = vld [vmem:[%s4002_s0 + $0x130] sm:$0xff] }
 0x33e   :  { %2473 = vmatprep.subr.msk.bf16.mxu1 %vm3142_vm13, %v2471_v38  ;;  %2478 = vmatprep.subr.bf16.mxu0 %v2477_v47  ;;  %v2513_v5 = vpack.c.bf16 %v1638_v3, %v1637_v59  ;;  %v1622_v47 = vld [vmem:[%s4002_s0 + $0x118] sm:$0xff]  ;;  %v2519_v38 = vpack.c.bf16 %v1624_v54, %v1623_v10  ;;  %v1669_v31 = vld [vmem:[%s4002_s0 + $0x290] sm:$0xff] }
 0x33f   :  { %2476 = vmatpush1.bf16.msk.msra.mxu1 %vm3142_vm13, %v2474_v45  ;;  %v2515_v34 = vpack.c.bf16 %v1622_v47, %v1621_v28  ;;  %v1641_v45 = vld [vmem:[%s4002_s0 + $0x1b0] sm:$0xff]  ;;  %v1626_v19 = vld [vmem:[%s4002_s0 + $0x138] sm:$0xff]  ;;  %v1671_v47 = vld [vmem:[%s4002_s0 + $0x2a0] sm:$0xff] }
 0x340   :  { %2176 = vmatmul.mubr.msk.f32.vlgmr.msra.gmra.mrb[4].mxu0 %vm698_vm14, %v3308_v36  ;;  %2510 = vmatprep.subr.bf16.mxu1 %v2509_v56  ;;  %v2523_v37 = vpack.c.bf16 %v1626_v19, %v1625_v42  ;;  %v1653_v3 = vld [vmem:[%s4002_s0 + $0x210] sm:$0xff] }
 0x341   :  { %1451 = vmatprep.mubr.f32.mxu0 %v2806_v53  ;;  %2480 = vmatpush3.bf16.msra.mxu0 %v2479_v57  ;;  %v1642_v57 = vld [vmem:[%s4002_s0 + $0x1b8] sm:$0xff] }
 0x342   :  { %2178 = vmatmul.mubr.msk.f32.vlgmr.msra.gmra.mrb[6].mxu1 %vm698_vm14, %v3308_v36  ;;  %2482 = vmatprep.subr.bf16.mxu0 %v2481_v30  ;;  %v1610_v36 = vld [vmem:[%s4002_s0 + $0xb8] sm:$0xff]  ;;  %v2521_v30 = vpack.c.bf16 %v1642_v57, %v1641_v45  ;;  %v1656_v45 = vld [vmem:[%s4002_s0 + $0x228] sm:$0xff]  ;;  %v1673_v57 = vld [vmem:[%s4002_s0 + $0x2b0] sm:$0xff] }
 0x343   :  { %1528 = vmatprep.mubr.f32.mxu1 %v2806_v53  ;;  %v2489_v52 = vpack.c.bf16 %v1610_v36, %v1609_v8  ;;  %v1593_v53 = vld [vmem:[%s4002_s0 + $0x30] sm:$0xff]  ;;  %2512 = vmatpush3.bf16.msra.mxu1 %v2511_v4  ;;  %v2527_v8 = vpack.c.bf16 %v1628_v7, %v1627_v55 }
 0x344   :  { %2177 = vmatmul.mubr.msk.f32.gmra.mrb[6].mxu0 %vm698_vm14, %v3313_v50  ;;  %2514 = vmatprep.subr.bf16.mxu1 %v2513_v5  ;;  %v1645_v36 = vld [vmem:[%s4002_s0 + $0x1d0] sm:$0xff]  ;;  %v1654_v5 = vld [vmem:[%s4002_s0 + $0x218] sm:$0xff] }
 0x345   :  { %2484 = vmatpush3.bf16.msra.mxu0 %v2483_v49  ;;  %v1644_v49 = vld [vmem:[%s4002_s0 + $0x1c8] sm:$0xff] }
 0x346   :  { %2179 = vmatmul.mubr.msk.f32.gmra.mrb[8].mxu1 %vm698_vm14, %v3313_v50  ;;  %2486 = vmatprep.subr.bf16.mxu0 %v2485_v17  ;;  %v2491_v50 = vpack.c.bf16 %v1594_v60, %v1593_v53  ;;  %v2525_v17 = vpack.c.bf16 %v1644_v49, %v1643_v51  ;;  %v1629_v53 = vld [vmem:[%s4002_s0 + $0x150] sm:$0xff]  ;;  %v1630_v60 = vld [vmem:[%s4002_s0 + $0x158] sm:$0xff]  ;;  %v1675_v49 = vld [vmem:[%s4002_s0 + $0x2c0] sm:$0xff] }
 0x347   :  { %2516 = vmatpush3.bf16.msra.mxu1 %v2515_v34  ;;  %v2531_v63 = vpack.c.bf16 %v1630_v60, %v1629_v53  ;;  %v3840_v2 = vpop.permute.xlu0 %1548  ;;  %v1672_v34 = vld [vmem:[%s4002_s0 + $0x2a8] sm:$0xff]  ;;  %v1658_v51 = vld [vmem:[%s4002_s0 + $0x238] sm:$0xff] }
 0x348   :  { %2518 = vmatprep.subr.bf16.mxu1 %v2517_v16  ;;  %v2547_v16 = vpack.c.bf16 %v1654_v5, %v1653_v3  ;;  %v2549_v54 = vpack.c.bf16 %v1672_v34, %v1671_v47 }
 0x349   :  { %2488 = vmatpush3.bf16.msra.mxu0 %v2487_v58  ;;  %v1646_v58 = vld [vmem:[%s4002_s0 + $0x1d8] sm:$0xff] }
 0x34a   :  { %2490 = vmatprep.subr.bf16.mxu0 %v2489_v52  ;;  %v2529_v52 = vpack.c.bf16 %v1646_v58, %v1645_v36  ;;  %v1660_v36 = vld [vmem:[%s4002_s0 + $0x248] sm:$0xff]  ;;  %v1677_v58 = vld [vmem:[%s4002_s0 + $0x2d0] sm:$0xff] }
 0x34b   :  { %2520 = vmatpush3.bf16.msra.mxu1 %v2519_v38  ;;  %v3858_v62 = vpop.permute.xlu0 %1552  ;;  %v1655_v38 = vld [vmem:[%s4002_s0 + $0x220] sm:$0xff] }
 0x34c   :  { %2522 = vmatprep.subr.bf16.mxu1 %v2521_v30  ;;  %v1674_v30 = vld [vmem:[%s4002_s0 + $0x2b8] sm:$0xff]  ;;  %v2551_v42 = vpack.c.bf16 %v1656_v45, %v1655_v38 }
 0x34d   :  { %2492 = vmatpush3.bf16.msra.mxu0 %v2491_v50  ;;  %v1648_v50 = vld [vmem:[%s4002_s0 + $0x1e8] sm:$0xff]  ;;  %v2553_v19 = vpack.c.bf16 %v1674_v30, %v1673_v57 }
 0x34e   :  { %2494 = vmatprep.subr.bf16.mxu0 %v2493_v22  ;;  %v2533_v22 = vpack.c.bf16 %v1648_v50, %v1647_v1  ;;  %v1662_v1 = vld [vmem:[%s4002_s0 + $0x258] sm:$0xff]  ;;  %v1679_v50 = vld [vmem:[%s4002_s0 + $0x2e0] sm:$0xff] }
 0x34f   :  { %2524 = vmatpush3.bf16.msra.mxu1 %v2523_v37  ;;  %v1657_v37 = vld [vmem:[%s4002_s0 + $0x230] sm:$0xff] }
 0x350   :  { %2526 = vmatprep.subr.bf16.mxu1 %v2525_v17  ;;  %v1676_v17 = vld [vmem:[%s4002_s0 + $0x2c8] sm:$0xff]  ;;  %v2555_v55 = vpack.c.bf16 %v1658_v51, %v1657_v37 }
 0x351   :  { %2496 = vmatpush3.bf16.msra.mxu0 %v2495_v26  ;;  %v1650_v26 = vld [vmem:[%s4002_s0 + $0x1f8] sm:$0xff]  ;;  %v2557_v7 = vpack.c.bf16 %v1676_v17, %v1675_v49 }
 0x352   :  { %2498 = vmatprep.subr.bf16.mxu0 %v2497_v9  ;;  %v2537_v9 = vpack.c.bf16 %v1650_v26, %v1649_v6  ;;  %v1664_v6 = vld [vmem:[%s4002_s0 + $0x268] sm:$0xff] }
 0x353   :  { %2528 = vmatpush3.bf16.msra.mxu1 %v2527_v8  ;;  %v1659_v8 = vld [vmem:[%s4002_s0 + $0x240] sm:$0xff] }
 0x354   :  { %2530 = vmatprep.subr.bf16.mxu1 %v2529_v52  ;;  %v1678_v52 = vld [vmem:[%s4002_s0 + $0x2d8] sm:$0xff]  ;;  %v2559_v53 = vpack.c.bf16 %v1660_v36, %v1659_v8 }
 0x355   :  { %2500 = vmatpush3.bf16.msra.mxu0 %v2499_v61  ;;  %v2539_v61 = vpack.c.bf16 %v1634_v12, %v1633_v20  ;;  %v2561_v60 = vpack.c.bf16 %v1678_v52, %v1677_v58  ;;  %v1682_v20 = vld [vmem:[%s4002_s0 + $0x2f8] sm:$0xff]  ;;  %v2820_v58 = vmov 16  }
 0x356   :  { %2502 = vmatprep.subr.bf16.mxu0 %v2501_v14  ;;  %2795 = vset.pattern.permute.xlu0 %v2820_v58 }
 0x357   :  { %2532 = vmatpush3.bf16.msra.mxu1 %v2531_v63  ;;  %v1661_v63 = vld [vmem:[%s4002_s0 + $0x250] sm:$0xff]  ;;  %2796 = vset.pattern.permute.xlu1 %v2820_v58 }
 0x358   :  { %2534 = vmatprep.subr.bf16.mxu1 %v2533_v22  ;;  %v1680_v22 = vld [vmem:[%s4002_s0 + $0x2e8] sm:$0xff]  ;;  %v2563_v13 = vpack.c.bf16 %v1662_v1, %v1661_v63 }
 0x359   :  { %2504 = vmatpush3.bf16.msra.mxu0 %v2503_v29  ;;  %v3842_v29 = vpop.permute.xlu1 %1568  ;;  %v2565_v25 = vpack.c.bf16 %v1680_v22, %v1679_v50 }
 0x35a   :  { %2506 = vmatprep.subr.bf16.mxu0 %v2505_v43  ;;  %v1652_v43 = vld [vmem:[%s4002_s0 + $0x208] sm:$0xff] }
 0x35b   :  { %2536 = vmatpush3.bf16.msra.mxu1 %v2535_v48  ;;  %v2543_v40 = vpack.c.bf16 %v1652_v43, %v1651_v21  ;;  %v1663_v48 = vld [vmem:[%s4002_s0 + $0x260] sm:$0xff] }
 0x35c   :  { %2538 = vmatprep.subr.bf16.mxu1 %v2537_v9  ;;  %v1681_v9 = vld [vmem:[%s4002_s0 + $0x2f0] sm:$0xff] }
 0x35d   :  { %2508 = vmatpush3.bf16.msra.mxu0 %v2507_v32  ;;  %v1670_v32 = vld [vmem:[%s4002_s0 + $0x298] sm:$0xff]  ;;  %v3876_v44 = vpop.permute.xlu1 %1572  ;;  %v2569_v43 = vpack.c.bf16 %v1682_v20, %v1681_v9 }
 0x35e   :  { %2542 = vmatprep.subr.bf16.mxu0 %v2541_v41  ;;  %v2545_v59 = vpack.c.bf16 %v1670_v32, %v1669_v31 }
 0x35f   :  { %2540 = vmatpush3.bf16.msra.mxu1 %v2539_v61 }
 0x3f7   :  { %v1370_v11 = vpop.f32.mrb[2].mxu1 }
 0x3f8   :  { %v1535_v14 = vmax.f32 %v1370_v11, 0.0  ;;  %v1372_v23 = vpop.f32.mrb[3].mxu1 }
 0x3f9   :  { %v1536_v46 = vmax.f32 %v1372_v23, 0.0  ;;  %v2567_v23 = vpack.c.bf16 %v1664_v6, %v1663_v48 }
 0x3fa   :  { %v1555_v24 = vmul.f32 %v3840_v2, %v1535_v14 }
 0x3fb   :  { %v1556_v33 = vmul.f32 %v3840_v2, %v1536_v46  ;;  %v1376_v39 = vpop.f32.mrb[4].mxu1 }
 0x3fc   :  { %v1541_v35 = vmax.f32 %v1376_v39, 0.0  ;;  %v1378_v27 = vpop.f32.mrb[5].mxu1  ;;  %v1575_v18 = vadd.f32 %v3842_v29, %v1555_v24  ;;  %v1666_v39 = vld [vmem:[%s4002_s0 + $0x278] sm:$0xff] }
 0x3fd   :  { %v1542_v56 = vmax.f32 %v1378_v27, 0.0  ;;  %v1576_v4 = vadd.f32 %v3842_v29, %v1556_v33  ;;  %v1665_v33 = vld [vmem:[%s4002_s0 + $0x270] sm:$0xff] }
 0x3fe   :  { %v1561_v41 = vmul.f32 %v3858_v62, %v1541_v35 }
 0x3ff   :  { %v1562_v28 = vmul.f32 %v3858_v62, %v1542_v56  ;;  %1747 = vmatprep.mubr.f32.mxu0 %v1576_v4 }
 0x400   :  { %1748 = vmatmul.mubr.f32.vlgmr.msra.gmra.mrb[8].mxu0 %v1575_v18  ;;  %v1581_v10 = vadd.f32 %v3876_v44, %v1561_v41 }
 0x401   :  { %2544 = vmatpush3.bf16.msra.mxu0 %v2543_v40  ;;  %v1582_v15 = vadd.f32 %v3876_v44, %v1562_v28 }
 0x402   :  { %2546 = vmatprep.subr.bf16.mxu0 %v2545_v59  ;;  %v2571_v59 = vpack.c.bf16 %v1666_v39, %v1665_v33  ;;  %v2169_v33 = vld [vmem:[%s4003_s1 + $0x8] sm:$0xff] }
 0x403   :  { %1752 = vmatprep.mubr.f32.mxu0 %v1582_v15  ;;  %v407_v39 = vmax.f32 %v2870_v0, %v2169_v33 }
 0x404   :  { %1753 = vmatmul.mubr.f32.gmra.mrb[10].mxu0 %v1581_v10 }
 0x405   :  { %2548 = vmatpush3.bf16.msra.mxu0 %v2547_v16  ;;  %411 = vst [vmem:[#allocation34 + $0x40] sm:$0xff] %v407_v39 }
 0x406   :  { %2550 = vmatprep.subr.bf16.mxu0 %v2549_v54 }
 0x409   :  { %2552 = vmatpush3.bf16.msra.mxu0 %v2551_v42 }
 0x40a   :  { %2554 = vmatprep.subr.bf16.mxu0 %v2553_v19  ;;  %v2163_v19 = vld [vmem:[%s4005_s3] sm:$0xff] }
 0x40b   :  { %v315_v37 = vmax.f32 %v2870_v0, %v2163_v19 }
 0x40d   :  { %2556 = vmatpush3.bf16.msra.mxu0 %v2555_v55  ;;  %v319_v51 = vmax.f32 %v315_v37, %v2870_v0  ;;  %v2166_v55 = vld [vmem:[%s4005_s3 + $0x18] sm:$0xff] }
 0x40e   :  { %2558 = vmatprep.subr.bf16.mxu0 %v2557_v7  ;;  %v369_v7 = vmax.f32 %v2870_v0, %v2166_v55 }
 0x40f   :  { %1914 = vperm.xlu0 %2795, %v319_v51  }
 0x410   :  { %v373_v36 = vmax.f32 %v369_v7, %v2870_v0 }
 0x411   :  { %2560 = vmatpush3.bf16.msra.mxu0 %v2559_v53 }
 0x412   :  { %2562 = vmatprep.subr.bf16.mxu0 %v2561_v60 }
 0x413   :  { %v1447_v26 = vpop.f32.mrb[4].mxu0  ;;  %1929 = vperm.xlu0 %2795, %v373_v36  }
 0x414   :  { %v1537_v12 = vmax.f32 %v1447_v26, 0.0  ;;  %v1449_v61 = vpop.f32.mrb[5].mxu0 }
 0x415   :  { %v1538_v11 = vmax.f32 %v1449_v61, 0.0  ;;  %2564 = vmatpush3.bf16.msra.mxu0 %v2563_v13  ;;  %v1524_v14 = vpop.f32.mrb[6].mxu1 }
 0x416   :  { %v1557_v46 = vmul.f32 %v3840_v2, %v1537_v12  ;;  %v1539_v24 = vmax.f32 %v1524_v14, 0.0  ;;  %v1526_v21 = vpop.f32.mrb[7].mxu1  ;;  %2566 = vmatprep.subr.bf16.mxu0 %v2565_v25 }
 0x417   :  { %v1558_v31 = vmul.f32 %v3840_v2, %v1538_v11  ;;  %v1540_v32 = vmax.f32 %v1526_v21, 0.0  ;;  %v1453_v35 = vpop.f32.mrb[6].mxu0 }
 0x418   :  { %v1543_v27 = vmax.f32 %v1453_v35, 0.0  ;;  %v1455_v56 = vpop.f32.mrb[7].mxu0  ;;  %v1577_v3 = vadd.f32 %v3842_v29, %v1557_v46  ;;  %v1559_v5 = vmul.f32 %v3840_v2, %v1539_v24  ;;  %v2031_v35 = vld [vmem:[#allocation34 + $0x40] sm:$0x3] }
 0x419   :  { %v1560_v4 = vmul.f32 %v3840_v2, %v1540_v32  ;;  %v1544_v40 = vmax.f32 %v1455_v56, 0.0  ;;  %2568 = vmatpush3.bf16.msra.mxu0 %v2567_v23  ;;  %v1530_v18 = vpop.f32.mrb[8].mxu1  ;;  %v1578_v41 = vadd.f32 %v3842_v29, %v1558_v31  ;;  %v2168_v31 = vld [vmem:[%s4003_s1] sm:$0xff] }
 0x41a   :  { %v1563_v28 = vmul.f32 %v3858_v62, %v1543_v27  ;;  %v1545_v47 = vmax.f32 %v1530_v18, 0.0  ;;  %v1532_v34 = vpop.f32.mrb[9].mxu1  ;;  %2570 = vmatprep.subr.bf16.mxu0 %v2569_v43  ;;  %v1579_v2 = vadd.f32 %v3842_v29, %v1559_v5  ;;  %v390_v32 = vmax.f32 %v2870_v0, %v2168_v31 }
 0x41b   :  { %v1564_v15 = vmul.f32 %v3858_v62, %v1544_v40  ;;  %v1546_v16 = vmax.f32 %v1532_v34, 0.0  ;;  %1822 = vmatprep.mubr.f32.mxu1 %v1578_v41  ;;  %v1580_v10 = vadd.f32 %v3842_v29, %v1560_v4  ;;  %v2164_v29 = vld [vmem:[%s4005_s3 + $0x8] sm:$0xff]  ;;  %v2821_v27 = vmov 32  }
 0x41c   :  { %1823 = vmatmul.mubr.f32.vlgmr.msra.gmra.mrb[10].mxu1 %v1577_v3  ;;  %v1565_v45 = vmul.f32 %v3858_v62, %v1545_v47  ;;  %v1583_v57 = vadd.f32 %v3876_v44, %v1563_v28  ;;  %2798 = vset.pattern.permute.xlu0 %v2821_v27 }
 0x41d   :  { %v1566_v54 = vmul.f32 %v3858_v62, %v1546_v16  ;;  %2572 = vmatpush3.bf16.msra.mxu0 %v2571_v59  ;;  %1897 = vmatprep.mubr.f32.mxu0 %v1580_v10  ;;  %v1584_v38 = vadd.f32 %v3876_v44, %v1564_v15  ;;  %v333_v62 = vmax.f32 %v2870_v0, %v2164_v29 }
 0x41e   :  { %v1585_v42 = vadd.f32 %v3876_v44, %v1565_v45  ;;  %2039 = vperm.xlu0 %2798, %v2031_v35  }
 0x41f   :  { %1827 = vmatprep.mubr.f32.mxu1 %v1584_v38  ;;  %v1586_v30 = vadd.f32 %v3876_v44, %v1566_v54  ;;  %v337_v49 = vmax.f32 %v333_v62, %v2870_v0  ;;  %v2165_v44 = vld [vmem:[%s4005_s3 + $0x10] sm:$0xff] }
 0x420   :  { %1898 = vmatmul.mubr.f32.vlgmr.msra.gmra.mrb[12].mxu0 %v1579_v2  ;;  %1828 = vmatmul.mubr.f32.gmra.mrb[12].mxu1 %v1583_v57  ;;  %v351_v17 = vmax.f32 %v2870_v0, %v2165_v44 }
 0x421   :  { %1902 = vmatprep.mubr.f32.mxu0 %v1586_v30  ;;  %2328 = vmatprep.mubr.msk.f32.mxu1 %vm1932_vm7, %v319_v51 }
 0x422   :  { %v355_v8 = vmax.f32 %v351_v17, %v2870_v0  ;;  %1919 = vperm.xlu1 %2796, %v337_v49  }
 0x424   :  { %1903 = vmatmul.mubr.f32.gmra.mrb[14].mxu0 %v1585_v42 }
 0x426   :  { %1924 = vperm.xlu1 %2796, %v355_v8  }
 0x42a   :  { %2797 = vset.pattern.permute.xlu1 %v2821_v27 }
 0x42b   :  { %2034 = vperm.xlu1 %2797, %v390_v32  }
 0x48e   :  { %v1915_v56 = vpop.permute.xlu0 %1914 }
 0x492   :  { %v1930_v47 = vpop.permute.xlu0 %1929 }
 0x49d   :  { %v2040_v45 = vpop.permute.xlu0 %2039 }
 0x4a1   :  { %v1920_v4 = vpop.permute.xlu1 %1919 }
 0x4a5   :  { %v1925_v0 = vpop.permute.xlu1 %1924 }
 0x4aa   :  { %v2035_v57 = vpop.permute.xlu1 %2034 }
 0x4d3   :  { %v2230_v52 = vpop.f32.mrb[8].mxu0 }
 0x4d4   :  { %v2231_v53 = vpop.f32.mrb[9].mxu0 }
 0x4d5   :  { %v2232_v60 = vadd.f32 %v2231_v53, %v2230_v52 }
 0x4d7   :  { %v2233_v63 = vpop.f32.mrb[10].mxu0 }
 0x4d8   :  { %v2234_v1 = vpop.f32.mrb[11].mxu0 }
 0x4d9   :  { %v2235_v50 = vadd.f32 %v2234_v1, %v2233_v63 }
 0x4ef   :  { %v2268_v22 = vpop.f32.mrb[10].mxu1 }
 0x4f0   :  { %v2269_v13 = vpop.f32.mrb[11].mxu1 }
 0x4f1   :  { %v2270_v25 = vadd.f32 %v2269_v13, %v2268_v22 }
 0x4f3   :  { %v1825_v48 = vadd.f32 %v2270_v25, %v2232_v60  ;;  %v2306_v6 = vpop.f32.mrb[12].mxu0  ;;  %v2271_v26 = vpop.f32.mrb[12].mxu1 }
 0x4f4   :  { %v2307_v9 = vpop.f32.mrb[13].mxu0  ;;  %v2272_v20 = vpop.f32.mrb[13].mxu1 }
 0x4f5   :  { %v2308_v12 = vadd.f32 %v2307_v9, %v2306_v6  ;;  %v2273_v61 = vadd.f32 %v2272_v20, %v2271_v26 }
 0x4f7   :  { %v1900_v11 = vadd.f32 %v2308_v12, %v1825_v48  ;;  %v1830_v14 = vadd.f32 %v2273_v61, %v2235_v50  ;;  %v2309_v23 = vpop.f32.mrb[14].mxu0 }
 0x4f8   :  { %v2310_v46 = vpop.f32.mrb[15].mxu0 }
 0x4f9   :  { %v2311_v24 = vadd.f32 %v2310_v46, %v2309_v23 }
 0x4fb   :  { %v1905_v21 = vadd.f32 %v2311_v24, %v1830_v14 }
 0x4fd   :  { %v2573_v43 = vpack.c.bf16 %v1905_v21, %v1900_v11 }
 0x4ff   :  { %2574 = vmatprep.subr.bf16.mxu1 %v2573_v43 }
 0x500   :  { %2576 = vmatpush3.bf16.msra.mxu1 %v2573_v43 }
 0x503   :  { %2329 = vmatmul.mubr.msk.f32.vlgmr.msra.gmra.mrb[14].mxu1 %vm1932_vm7, %v337_v49 }
 0x504   :  { %2331 = vmatprep.mubr.msk.f32.mxu1 %vm1932_vm7, %v355_v8 }
 0x507   :  { %2332 = vmatmul.mubr.msk.f32.gmra.mrb[16].mxu1 %vm1932_vm7, %v373_v36 }
 0x508   :  { %2342 = vmatprep.mubr.msk.f32.mxu1 %vm2042_vm8, %v390_v32 }
 0x5d6   :  { %v2330_v40 = vpop.f32.mrb[14].mxu1 }
 0x5d7   :  { %v2013_v18 = vadd.f32 %v2330_v40, %v1920_v4  ;;  %v2007_v41 = vpop.f32.mrb[15].mxu1 }
 0x5d8   :  { %v2008_v59 = vadd.f32 %v2007_v41, %v1915_v56 }
 0x5d9   :  { %v2027_v3 = vmax.f32 %v2013_v18, 0.0 }
 0x5da   :  { %v2026_v5 = vmax.f32 %v2008_v59, 0.0  ;;  %v2333_v28 = vpop.f32.mrb[16].mxu1 }
 0x5db   :  { %v2023_v34 = vadd.f32 %v2333_v28, %v1930_v47  ;;  %v2017_v15 = vpop.f32.mrb[17].mxu1 }
 0x5dc   :  { %v2577_v16 = vpack.c.bf16 %v2027_v3, %v2026_v5  ;;  %v2018_v10 = vadd.f32 %v2017_v15, %v1925_v0 }
 0x5dd   :  { %v2029_v54 = vmax.f32 %v2023_v34, 0.0 }
 0x5de   :  { %v2028_v38 = vmax.f32 %v2018_v10, 0.0  ;;  %2578 = vmatprep.subr.bf16.mxu1 %v2577_v16 }
 0x5df   :  { %2580 = vmatpush3.bf16.msra.mxu1 %v2577_v16 }
 0x5e0   :  { %v2581_v2 = vpack.c.bf16 %v2029_v54, %v2028_v38 }
 0x5e2   :  { %2582 = vmatprep.subr.bf16.mxu1 %v2581_v2 }
 0x5e3   :  { %2584 = vmatpush3.bf16.msra.mxu1 %v2581_v2 }
 0x5e6   :  { %2343 = vmatmul.mubr.msk.f32.vlgmr.msra.gmra.mrb[18].mxu1 %vm2042_vm8, %v2031_v35 }
 0x6b9   :  { %v2344_v30 = vpop.f32.mrb[18].mxu1 }
 0x6ba   :  { %v2119_v42 = vadd.f32 %v2344_v30, %v2040_v45  ;;  %v2113_v19 = vpop.f32.mrb[19].mxu1 }
 0x6bb   :  { %v2114_v37 = vadd.f32 %v2113_v19, %v2035_v57 }
 0x6bc   :  { %2125 = vst.msk [vmem:[%s4010_s8 + $0x8] sm:$0x3] %vm2124_vm9, %v2119_v42 }
 0x6bd   :  { %2123 = vst.msk [vmem:[%s4010_s8] sm:$0xff] %vm2122_vm10, %v2114_v37 }

</bundles_post_ra>
